<compile_context>
chip_gen: v7x
topology: tpu7x:2x2x1
jax: 0.10.0
libtpu: 0.0.40
codegen_flags: <defaults>
</compile_context>

<pallas_src>
import math

import jax
import jax.numpy as jnp
from jax import lax
from jax.experimental import pallas as pl
from jax.experimental.pallas import tpu as pltpu

# ---- hyperparameters (small, consistent with the module definition) ----
D_MODEL = 32
NUM_HEADS = 4
D_K = D_MODEL // NUM_HEADS
D_FF = 64
EPS = 1e-6
NEG_INF = 1.0e9  # module's self.inf


# -------------------- fused decoder-block kernel (one batch slab per step) ----------
def _decoder_kernel(x_ref, e_ref, sm_ref, cm_ref, hm_ref, ln_ref,
                    sw_ref, sb_ref, ew_ref, eb_ref,
                    w1_ref, b1_ref, w2_ref, b2_ref, o_ref):
    x = x_ref[...]            # (NQ, D)   flattened batch-slab of decoder tokens
    e = e_ref[...]            # (NK, D)   flattened batch-slab of encoder output
    hm = hm_ref[...]          # (H*NQ, D) per-head lane mask (1 on head h's columns)
    ln = ln_ref[...]          # (6, 1, D) layernorm gains/biases
    nq = x.shape[0]

    def layer_norm(v, g, b):
        mu = jnp.mean(v, axis=-1, keepdims=True)
        var = jnp.mean(jnp.square(v - mu), axis=-1, keepdims=True)
        return (v - mu) * lax.rsqrt(var + EPS) * g + b

    def attention(q_in, kv_in, w, b, mask_add):
        # Row-wise projections on the whole slab (scale already folded into w[0]/b[0]).
        q = jnp.dot(q_in, w[0], preferred_element_type=jnp.float32) + b[0]   # (NQ, D)
        k = jnp.dot(kv_in, w[1], preferred_element_type=jnp.float32) + b[1]  # (NK, D)
        v = jnp.dot(kv_in, w[2], preferred_element_type=jnp.float32) + b[2]  # (NK, D)

        # Stack queries along sublanes for all heads, zero non-head columns (VPU).
        q_stk = jnp.concatenate([q] * NUM_HEADS, axis=0) * hm                # (H*NQ, D)

        # All heads' scores in one matmul: contract last dims (no transpose).
        s = lax.dot_general(q_stk, k, (((1,), (1,)), ((), ())),
                            preferred_element_type=jnp.float32)              # (H*NQ, NK)
        s = s + mask_add                                                      # additive mask

        # One softmax pass for every head / row / batch element in the slab.
        m = jnp.max(s, axis=-1, keepdims=True)
        ex = jnp.exp(s - m)
        denom = jnp.sum(ex, axis=-1, keepdims=True)
        p = ex * pl.reciprocal(denom, approx=True)

        # All heads' attention outputs in one matmul, then fold the head-stacked
        # (H*NQ, D) result into the concatenated (NQ, D) layout with a single
        # lane-mask multiply and aligned sublane-block adds.
        pv = jnp.dot(p, v, preferred_element_type=jnp.float32) * hm          # (H*NQ, D)
        acc = pv[0:nq, :]
        for h in range(1, NUM_HEADS):
            acc = acc + pv[h * nq:(h + 1) * nq, :]

        # Single output projection for all heads.
        return jnp.dot(acc, w[3], preferred_element_type=jnp.float32) + b[3]

    # --- self attention block ---
    x1 = layer_norm(x, ln[0], ln[1])
    x = x + attention(x1, x1, sw_ref[...], sb_ref[...], sm_ref[...])
    # --- encoder (cross) attention block ---
    x2 = layer_norm(x, ln[2], ln[3])
    x = x + attention(x2, e, ew_ref[...], eb_ref[...], cm_ref[...])
    # --- feed forward (source forward applies no ReLU despite fc1's name) ---
    x3 = layer_norm(x, ln[4], ln[5])
    hmid = jnp.dot(x3, w1_ref[...], preferred_element_type=jnp.float32) + b1_ref[...]
    x = x + jnp.dot(hmid, w2_ref[...], preferred_element_type=jnp.float32) + b2_ref[...]

    o_ref[...] = x.astype(o_ref.dtype)


# -------------------- one-time prep (hoisted out of the per-call hot path) ----------
def _num_tensorcores():
    try:
        kind = jax.devices()[0].device_kind.lower()
    except Exception:
        return 1
    return 2 if "v7" in kind else 1   # v7x: 2 TensorCores per chip


def prepare(params, d_mask, e_mask, num_blocks=None):
    """One-time prep: fold 1/sqrt(d_k) into Q proj, build head lane-mask and
    additive block-diagonal 'mega' attention masks.  Call once, reuse per step."""
    ln, sw, sb, ew, eb, w1, b1, w2, b2 = params
    B, L, _ = d_mask.shape
    S = e_mask.shape[-1]
    if num_blocks is None:
        num_blocks = 2 if (_num_tensorcores() >= 2 and B % 2 == 0 and B >= 2) else 1
    Bb = B // num_blocks
    nq = Bb * L

    scale = 1.0 / math.sqrt(D_K)
    sw = sw.at[0].multiply(scale)
    sb = sb.at[0].multiply(scale)
    ew = ew.at[0].multiply(scale)
    eb = eb.at[0].multiply(scale)

    # Per-head lane mask: rows [h*nq, (h+1)*nq) are 1 on head h's D_K columns.
    col = jnp.arange(D_MODEL)[None, :]                                 # (1, D)
    row_head = jnp.repeat(jnp.arange(NUM_HEADS), nq)[:, None]          # (H*nq, 1)
    head_mask = (col // D_K == row_head).astype(jnp.float32)           # (H*nq, D)

    def mega(mask, lq, lk):
        # mask: (B, lq or 1, lk) 1/0 -> additive block-diagonal mega mask
        # of shape (num_blocks * H * Bb * lq, Bb * lk).
        mask = jnp.broadcast_to(mask, (B, lq, lk))
        add = jnp.where(mask == 0.0, -NEG_INF, 0.0).astype(jnp.float32)
        add = add.reshape(num_blocks, Bb, lq, lk)
        bi = jnp.arange(Bb)
        same_batch = (bi[:, None, None, None] == bi[None, None, :, None])  # (Bb,1,Bb,1)
        big = jnp.where(same_batch, add[:, :, :, None, :], -NEG_INF)       # (nb,Bb,lq,Bb,lk)
        big = big.reshape(num_blocks, Bb * lq, Bb * lk)
        big = jnp.tile(big, (1, NUM_HEADS, 1))                             # (nb, H*Bb*lq, Bb*lk)
        return big.reshape(num_blocks * NUM_HEADS * Bb * lq, Bb * lk)

    self_mask = mega(d_mask, L, L)   # (nb*H*nq, Bb*L)
    cross_mask = mega(e_mask, L, S)  # (nb*H*nq, Bb*S)

    return (self_mask, cross_mask, head_mask,
            ln, sw, sb, ew, eb, w1, b1, w2, b2)


# -------------------- hot-path wrapper (pallas_call only) ----------------------------
@jax.jit
def decoder_layer_run(x, e_output, prepped):
    (sm, cm, hm, ln, sw, sb, ew, eb, w1, b1, w2, b2) = prepped
    B, L, D = x.shape
    S = e_output.shape[1]
    nq = hm.shape[0] // NUM_HEADS          # Bb * L  (rows per batch slab)
    nk = cm.shape[1]                       # Bb * S
    num_blocks = (B * L) // nq

    x_flat = x.reshape(B * L, D)
    e_flat = e_output.reshape(B * S, D)

    const = lambda shape: pl.BlockSpec(shape, lambda i, _s=len(shape): (0,) * _s)

    out_flat = pl.pallas_call(
        _decoder_kernel,
        out_shape=jax.ShapeDtypeStruct((B * L, D), x.dtype),
        grid=(num_blocks,),
        in_specs=[
            pl.BlockSpec((nq, D), lambda i: (i, 0)),                 # x slab
            pl.BlockSpec((nk, D), lambda i: (i, 0)),                 # e slab
            pl.BlockSpec((NUM_HEADS * nq, nq), lambda i: (i, 0)),    # self mega mask
            pl.BlockSpec((NUM_HEADS * nq, nk), lambda i: (i, 0)),    # cross mega mask
            const((NUM_HEADS * nq, D)),                              # head lane mask
            const((6, 1, D)),                                        # layernorm params
            const((4, D, D)), const((4, 1, D)),                      # self-attn w/b
            const((4, D, D)), const((4, 1, D)),                      # cross-attn w/b
            const((D, D_FF)), const((1, D_FF)),                      # fc1
            const((D_FF, D)), const((1, D)),                         # fc2
        ],
        out_specs=pl.BlockSpec((nq, D), lambda i: (i, 0)),
        compiler_params=pltpu.CompilerParams(
            dimension_semantics=("parallel",)),
    )(x_flat, e_flat, sm, cm, hm, ln, sw, sb, ew, eb, w1, b1, w2, b2)

    return out_flat.reshape(B, L, D)


def decoder_layer(x, e_output, d_mask, e_mask, params):
    """Convenience one-shot entry point (prepare + run). For repeated calls with the
    same params/masks, call prepare() once and decoder_layer_run() per step."""
    prepped = prepare(params, d_mask, e_mask)
    return decoder_layer_run(x, e_output, prepped)


# -------------------- pure-JAX reference (mirrors the PyTorch forward, eval mode) ----
def reference(x, e_output, d_mask, e_mask, params):
    ln, sw, sb, ew, eb, w1, b1, w2, b2 = params

    def layernorm(v, g, b):
        mu = jnp.mean(v, axis=-1, keepdims=True)
        var = jnp.mean(jnp.square(v - mu), axis=-1, keepdims=True)
        return (v - mu) * lax.rsqrt(var + EPS) * g + b

    def mha(q_in, k_in, v_in, w, b, mask):
        B, L, _ = q_in.shape
        S = k_in.shape[1]
        q = (q_in @ w[0] + b[0]).reshape(B, L, NUM_HEADS, D_K).transpose(0, 2, 1, 3)
        k = (k_in @ w[1] + b[1]).reshape(B, S, NUM_HEADS, D_K).transpose(0, 2, 1, 3)
        v = (v_in @ w[2] + b[2]).reshape(B, S, NUM_HEADS, D_K).transpose(0, 2, 1, 3)
        s = jnp.einsum("bhld,bhsd->bhls", q, k) / math.sqrt(D_K)
        s = jnp.where(mask[:, None, :, :] == 0.0, -NEG_INF, s)
        p = jax.nn.softmax(s, axis=-1)
        o = jnp.einsum("bhls,bhsd->bhld", p, v).transpose(0, 2, 1, 3).reshape(B, L, D_MODEL)
        return o @ w[3] + b[3]

    x1 = layernorm(x, ln[0], ln[1])
    x = x + mha(x1, x1, x1, sw, sb, d_mask)
    x2 = layernorm(x, ln[2], ln[3])
    x = x + mha(x2, e_output, e_output, ew, eb, e_mask)
    x3 = layernorm(x, ln[4], ln[5])
    h = x3 @ w1 + b1
    return x + (h @ w2 + b2)


def make_params(key):
    ks = jax.random.split(key, 8)
    scale = 0.05
    ln = jnp.concatenate(
        [jnp.ones((1, 1, D_MODEL), jnp.float32),
         jnp.zeros((1, 1, D_MODEL), jnp.float32)] * 3,
        axis=0)  # (6,1,D): g1,b1,g2,b2,g3,b3
    sw = scale * jax.random.normal(ks[0], (4, D_MODEL, D_MODEL), jnp.float32)
    sb = scale * jax.random.normal(ks[1], (4, 1, D_MODEL), jnp.float32)
    ew = scale * jax.random.normal(ks[2], (4, D_MODEL, D_MODEL), jnp.float32)
    eb = scale * jax.random.normal(ks[3], (4, 1, D_MODEL), jnp.float32)
    w1 = scale * jax.random.normal(ks[4], (D_MODEL, D_FF), jnp.float32)
    b1 = scale * jax.random.normal(ks[5], (1, D_FF), jnp.float32)
    w2 = scale * jax.random.normal(ks[6], (D_FF, D_MODEL), jnp.float32)
    b2 = scale * jax.random.normal(ks[7], (1, D_MODEL), jnp.float32)
    return (ln, sw, sb, ew, eb, w1, b1, w2, b2)


if __name__ == "__main__":
    B, L, S = 2, 8, 8
    key = jax.random.PRNGKey(0)
    kx, ke, kp = jax.random.split(key, 3)

    x = jax.random.normal(kx, (B, L, D_MODEL), jnp.float32)
    e_output = jax.random.normal(ke, (B, S, D_MODEL), jnp.float32)

    # decoder (causal) mask: (B, L, L); encoder padding mask: (B, 1, S), last 2 masked
    d_mask = jnp.broadcast_to(jnp.tril(jnp.ones((L, L), jnp.float32)), (B, L, L))
    e_mask = jnp.concatenate(
        [jnp.ones((B, 1, S - 2), jnp.float32), jnp.zeros((B, 1, 2), jnp.float32)], axis=-1)

    params = make_params(kp)

    # One-time prep (hoisted out of the hot path), then the pallas_call-only step.
    prepped = prepare(params, d_mask, e_mask)
    out = decoder_layer_run(x, e_output, prepped)
    out = jax.block_until_ready(out)

    ref = reference(x, e_output, d_mask, e_mask, params)
    assert out.shape == (B, L, D_MODEL)
    # tolerance slightly relaxed vs f32 reference because of the EUP approximate
    # reciprocal used in the in-kernel softmax
    assert jnp.allclose(out, ref, atol=2e-3, rtol=2e-3), "mismatch vs pure-JAX reference"

    print("KERNEL_OK")
</pallas_src>

<mosaic_0001>
module attributes {stable_mosaic.version = 11 : i64} {
  func.func @_decoder_kernel(%arg0: i32, %arg1: memref<16x32xf32, #tpu.memory_space<vmem>>, %arg2: memref<16x32xf32, #tpu.memory_space<vmem>>, %arg3: memref<64x16xf32, #tpu.memory_space<vmem>>, %arg4: memref<64x16xf32, #tpu.memory_space<vmem>>, %arg5: memref<64x32xf32, #tpu.memory_space<vmem>>, %arg6: memref<6x1x32xf32, #tpu.memory_space<vmem>>, %arg7: memref<4x32x32xf32, #tpu.memory_space<vmem>>, %arg8: memref<4x1x32xf32, #tpu.memory_space<vmem>>, %arg9: memref<4x32x32xf32, #tpu.memory_space<vmem>>, %arg10: memref<4x1x32xf32, #tpu.memory_space<vmem>>, %arg11: memref<32x64xf32, #tpu.memory_space<vmem>>, %arg12: memref<1x64xf32, #tpu.memory_space<vmem>>, %arg13: memref<64x32xf32, #tpu.memory_space<vmem>>, %arg14: memref<1x32xf32, #tpu.memory_space<vmem>>, %arg15: memref<16x32xf32, #tpu.memory_space<vmem>>) attributes {dimension_semantics = [#tpu.dimension_semantics<parallel>], iteration_bounds = array<i64: 1>, scalar_prefetch = 0 : i64, scratch_operands = 0 : i64, tpu.core_type = #tpu.core_type<tc>, window_params = [{transform_indices = @transform_0, window_bounds = array<i64: 16, 32>}, {transform_indices = @transform_1, window_bounds = array<i64: 16, 32>}, {transform_indices = @transform_2, window_bounds = array<i64: 64, 16>}, {transform_indices = @transform_3, window_bounds = array<i64: 64, 16>}, {pipeline_mode = #tpu.pipeline_mode<synchronous>, transform_indices = @transform_4, window_bounds = array<i64: 64, 32>}, {pipeline_mode = #tpu.pipeline_mode<synchronous>, transform_indices = @transform_5, window_bounds = array<i64: 6, 1, 32>}, {pipeline_mode = #tpu.pipeline_mode<synchronous>, transform_indices = @transform_6, window_bounds = array<i64: 4, 32, 32>}, {pipeline_mode = #tpu.pipeline_mode<synchronous>, transform_indices = @transform_7, window_bounds = array<i64: 4, 1, 32>}, {pipeline_mode = #tpu.pipeline_mode<synchronous>, transform_indices = @transform_8, window_bounds = array<i64: 4, 32, 32>}, {pipeline_mode = #tpu.pipeline_mode<synchronous>, transform_indices = @transform_9, window_bounds = array<i64: 4, 1, 32>}, {pipeline_mode = #tpu.pipeline_mode<synchronous>, transform_indices = @transform_10, window_bounds = array<i64: 32, 64>}, {pipeline_mode = #tpu.pipeline_mode<synchronous>, transform_indices = @transform_11, window_bounds = array<i64: 1, 64>}, {pipeline_mode = #tpu.pipeline_mode<synchronous>, transform_indices = @transform_12, window_bounds = array<i64: 64, 32>}, {pipeline_mode = #tpu.pipeline_mode<synchronous>, transform_indices = @transform_13, window_bounds = array<i64: 1, 32>}, {transform_indices = @transform_14, window_bounds = array<i64: 16, 32>}]} {
    %c0 = arith.constant 0 : index
    %c0_0 = arith.constant 0 : index
    %0 = vector.load %arg1[%c0, %c0_0] : memref<16x32xf32, #tpu.memory_space<vmem>>, vector<16x32xf32>
    %c0_1 = arith.constant 0 : index
    %c0_2 = arith.constant 0 : index
    %1 = vector.load %arg2[%c0_1, %c0_2] : memref<16x32xf32, #tpu.memory_space<vmem>>, vector<16x32xf32>
    %c0_3 = arith.constant 0 : index
    %c0_4 = arith.constant 0 : index
    %2 = vector.load %arg5[%c0_3, %c0_4] : memref<64x32xf32, #tpu.memory_space<vmem>>, vector<64x32xf32>
    %c0_5 = arith.constant 0 : index
    %c0_6 = arith.constant 0 : index
    %c0_7 = arith.constant 0 : index
    %3 = vector.load %arg6[%c0_5, %c0_6, %c0_7] : memref<6x1x32xf32, #tpu.memory_space<vmem>>, vector<6x1x32xf32>
    %4 = vector.extract_strided_slice %3 {offsets = [0, 0, 0], sizes = [1, 1, 32], strides = [1, 1, 1]} : vector<6x1x32xf32> to vector<1x1x32xf32>
    %5 = vector.shape_cast %4 : vector<1x1x32xf32> to vector<1x32xf32>
    %6 = vector.extract_strided_slice %3 {offsets = [1, 0, 0], sizes = [1, 1, 32], strides = [1, 1, 1]} : vector<6x1x32xf32> to vector<1x1x32xf32>
    %7 = vector.shape_cast %6 : vector<1x1x32xf32> to vector<1x32xf32>
    %cst = arith.constant dense<0.000000e+00> : vector<16xf32>
    %8 = vector.multi_reduction <add>, %0, %cst [1] : vector<16x32xf32> to vector<16xf32>
    %9 = vector.shape_cast %8 : vector<16xf32> to vector<16x1xf32>
    %cst_8 = arith.constant 3.200000e+01 : f32
    %10 = vector.broadcast %cst_8 : f32 to vector<16x1xf32>
    %11 = arith.divf %9, %10 : vector<16x1xf32>
    %12 = vector.broadcast %11 : vector<16x1xf32> to vector<16x32xf32>
    %13 = arith.subf %0, %12 : vector<16x32xf32>
    %14 = arith.mulf %13, %13 : vector<16x32xf32>
    %cst_9 = arith.constant dense<0.000000e+00> : vector<16xf32>
    %15 = vector.multi_reduction <add>, %14, %cst_9 [1] : vector<16x32xf32> to vector<16xf32>
    %16 = vector.shape_cast %15 : vector<16xf32> to vector<16x1xf32>
    %cst_10 = arith.constant 3.200000e+01 : f32
    %17 = vector.broadcast %cst_10 : f32 to vector<16x1xf32>
    %18 = arith.divf %16, %17 : vector<16x1xf32>
    %19 = vector.broadcast %11 : vector<16x1xf32> to vector<16x32xf32>
    %20 = arith.subf %0, %19 : vector<16x32xf32>
    %cst_11 = arith.constant 9.99999997E-7 : f32
    %21 = vector.broadcast %cst_11 : f32 to vector<16x1xf32>
    %22 = arith.addf %18, %21 : vector<16x1xf32>
    %23 = math.rsqrt %22 : vector<16x1xf32>
    %24 = vector.broadcast %23 : vector<16x1xf32> to vector<16x32xf32>
    %25 = arith.mulf %20, %24 : vector<16x32xf32>
    %26 = vector.broadcast %5 : vector<1x32xf32> to vector<16x32xf32>
    %27 = arith.mulf %25, %26 : vector<16x32xf32>
    %28 = vector.broadcast %7 : vector<1x32xf32> to vector<16x32xf32>
    %29 = arith.addf %27, %28 : vector<16x32xf32>
    %c0_12 = arith.constant 0 : index
    %c0_13 = arith.constant 0 : index
    %c0_14 = arith.constant 0 : index
    %30 = vector.load %arg7[%c0_12, %c0_13, %c0_14] : memref<4x32x32xf32, #tpu.memory_space<vmem>>, vector<4x32x32xf32>
    %c0_15 = arith.constant 0 : index
    %c0_16 = arith.constant 0 : index
    %c0_17 = arith.constant 0 : index
    %31 = vector.load %arg8[%c0_15, %c0_16, %c0_17] : memref<4x1x32xf32, #tpu.memory_space<vmem>>, vector<4x1x32xf32>
    %c0_18 = arith.constant 0 : index
    %c0_19 = arith.constant 0 : index
    %32 = vector.load %arg3[%c0_18, %c0_19] : memref<64x16xf32, #tpu.memory_space<vmem>>, vector<64x16xf32>
    %33 = vector.extract_strided_slice %30 {offsets = [0, 0, 0], sizes = [1, 32, 32], strides = [1, 1, 1]} : vector<4x32x32xf32> to vector<1x32x32xf32>
    %34 = vector.shape_cast %33 : vector<1x32x32xf32> to vector<32x32xf32>
    %cst_20 = arith.constant dense<0.000000e+00> : vector<16x32xf32>
    %35 = tpu.matmul %29, %34, %cst_20 {dimension_numbers = #tpu.dot_dimension_numbers<[1], [0], [0], [1], [0, 0, 1, 1], [], []>} : vector<16x32xf32>, vector<32x32xf32>, vector<16x32xf32> -> vector<16x32xf32>
    %36 = vector.extract_strided_slice %31 {offsets = [0, 0, 0], sizes = [1, 1, 32], strides = [1, 1, 1]} : vector<4x1x32xf32> to vector<1x1x32xf32>
    %37 = vector.shape_cast %36 : vector<1x1x32xf32> to vector<1x32xf32>
    %38 = vector.broadcast %37 : vector<1x32xf32> to vector<16x32xf32>
    %39 = arith.addf %35, %38 : vector<16x32xf32>
    %40 = vector.extract_strided_slice %30 {offsets = [1, 0, 0], sizes = [1, 32, 32], strides = [1, 1, 1]} : vector<4x32x32xf32> to vector<1x32x32xf32>
    %41 = vector.shape_cast %40 : vector<1x32x32xf32> to vector<32x32xf32>
    %cst_21 = arith.constant dense<0.000000e+00> : vector<16x32xf32>
    %42 = tpu.matmul %29, %41, %cst_21 {dimension_numbers = #tpu.dot_dimension_numbers<[1], [0], [0], [1], [0, 0, 1, 1], [], []>} : vector<16x32xf32>, vector<32x32xf32>, vector<16x32xf32> -> vector<16x32xf32>
    %43 = vector.extract_strided_slice %31 {offsets = [1, 0, 0], sizes = [1, 1, 32], strides = [1, 1, 1]} : vector<4x1x32xf32> to vector<1x1x32xf32>
    %44 = vector.shape_cast %43 : vector<1x1x32xf32> to vector<1x32xf32>
    %45 = vector.broadcast %44 : vector<1x32xf32> to vector<16x32xf32>
    %46 = arith.addf %42, %45 : vector<16x32xf32>
    %47 = vector.extract_strided_slice %30 {offsets = [2, 0, 0], sizes = [1, 32, 32], strides = [1, 1, 1]} : vector<4x32x32xf32> to vector<1x32x32xf32>
    %48 = vector.shape_cast %47 : vector<1x32x32xf32> to vector<32x32xf32>
    %cst_22 = arith.constant dense<0.000000e+00> : vector<16x32xf32>
    %49 = tpu.matmul %29, %48, %cst_22 {dimension_numbers = #tpu.dot_dimension_numbers<[1], [0], [0], [1], [0, 0, 1, 1], [], []>} : vector<16x32xf32>, vector<32x32xf32>, vector<16x32xf32> -> vector<16x32xf32>
    %50 = vector.extract_strided_slice %31 {offsets = [2, 0, 0], sizes = [1, 1, 32], strides = [1, 1, 1]} : vector<4x1x32xf32> to vector<1x1x32xf32>
    %51 = vector.shape_cast %50 : vector<1x1x32xf32> to vector<1x32xf32>
    %52 = vector.broadcast %51 : vector<1x32xf32> to vector<16x32xf32>
    %53 = arith.addf %49, %52 : vector<16x32xf32>
    %54 = tpu.concatenate %39, %39, %39, %39 in 0 : vector<16x32xf32>, vector<16x32xf32>, vector<16x32xf32>, vector<16x32xf32> -> vector<64x32xf32>
    %55 = arith.mulf %54, %2 : vector<64x32xf32>
    %cst_23 = arith.constant dense<0.000000e+00> : vector<64x16xf32>
    %56 = tpu.matmul %55, %46, %cst_23 {dimension_numbers = #tpu.dot_dimension_numbers<[1], [1], [0], [0], [0, 0, 1, 0], [], []>} : vector<64x32xf32>, vector<16x32xf32>, vector<64x16xf32> -> vector<64x16xf32>
    %57 = arith.addf %56, %32 : vector<64x16xf32>
    %cst_24 = arith.constant dense<0xFF800000> : vector<64xf32>
    %58 = vector.multi_reduction <maximumf>, %57, %cst_24 [1] : vector<64x16xf32> to vector<64xf32>
    %59 = vector.shape_cast %58 : vector<64xf32> to vector<64x1xf32>
    %60 = vector.broadcast %59 : vector<64x1xf32> to vector<64x16xf32>
    %61 = arith.subf %57, %60 : vector<64x16xf32>
    %62 = math.exp %61 : vector<64x16xf32>
    %cst_25 = arith.constant dense<0.000000e+00> : vector<64xf32>
    %63 = vector.multi_reduction <add>, %62, %cst_25 [1] : vector<64x16xf32> to vector<64xf32>
    %64 = vector.shape_cast %63 : vector<64xf32> to vector<64x1xf32>
    %65 = tpu.reciprocal %64 {approx = true} : vector<64x1xf32> -> vector<64x1xf32>
    %66 = vector.broadcast %65 : vector<64x1xf32> to vector<64x16xf32>
    %67 = arith.mulf %62, %66 : vector<64x16xf32>
    %cst_26 = arith.constant dense<0.000000e+00> : vector<64x32xf32>
    %68 = tpu.matmul %67, %53, %cst_26 {dimension_numbers = #tpu.dot_dimension_numbers<[1], [0], [0], [1], [0, 0, 1, 1], [], []>} : vector<64x16xf32>, vector<16x32xf32>, vector<64x32xf32> -> vector<64x32xf32>
    %69 = arith.mulf %68, %2 : vector<64x32xf32>
    %70 = vector.extract_strided_slice %69 {offsets = [0, 0], sizes = [16, 32], strides = [1, 1]} : vector<64x32xf32> to vector<16x32xf32>
    %71 = vector.extract_strided_slice %69 {offsets = [16, 0], sizes = [16, 32], strides = [1, 1]} : vector<64x32xf32> to vector<16x32xf32>
    %72 = arith.addf %70, %71 : vector<16x32xf32>
    %73 = vector.extract_strided_slice %69 {offsets = [32, 0], sizes = [16, 32], strides = [1, 1]} : vector<64x32xf32> to vector<16x32xf32>
    %74 = arith.addf %72, %73 : vector<16x32xf32>
    %75 = vector.extract_strided_slice %69 {offsets = [48, 0], sizes = [16, 32], strides = [1, 1]} : vector<64x32xf32> to vector<16x32xf32>
    %76 = arith.addf %74, %75 : vector<16x32xf32>
    %77 = vector.extract_strided_slice %30 {offsets = [3, 0, 0], sizes = [1, 32, 32], strides = [1, 1, 1]} : vector<4x32x32xf32> to vector<1x32x32xf32>
    %78 = vector.shape_cast %77 : vector<1x32x32xf32> to vector<32x32xf32>
    %cst_27 = arith.constant dense<0.000000e+00> : vector<16x32xf32>
    %79 = tpu.matmul %76, %78, %cst_27 {dimension_numbers = #tpu.dot_dimension_numbers<[1], [0], [0], [1], [0, 0, 1, 1], [], []>} : vector<16x32xf32>, vector<32x32xf32>, vector<16x32xf32> -> vector<16x32xf32>
    %80 = vector.extract_strided_slice %31 {offsets = [3, 0, 0], sizes = [1, 1, 32], strides = [1, 1, 1]} : vector<4x1x32xf32> to vector<1x1x32xf32>
    %81 = vector.shape_cast %80 : vector<1x1x32xf32> to vector<1x32xf32>
    %82 = vector.broadcast %81 : vector<1x32xf32> to vector<16x32xf32>
    %83 = arith.addf %79, %82 : vector<16x32xf32>
    %84 = arith.addf %0, %83 : vector<16x32xf32>
    %85 = vector.extract_strided_slice %3 {offsets = [2, 0, 0], sizes = [1, 1, 32], strides = [1, 1, 1]} : vector<6x1x32xf32> to vector<1x1x32xf32>
    %86 = vector.shape_cast %85 : vector<1x1x32xf32> to vector<1x32xf32>
    %87 = vector.extract_strided_slice %3 {offsets = [3, 0, 0], sizes = [1, 1, 32], strides = [1, 1, 1]} : vector<6x1x32xf32> to vector<1x1x32xf32>
    %88 = vector.shape_cast %87 : vector<1x1x32xf32> to vector<1x32xf32>
    %cst_28 = arith.constant dense<0.000000e+00> : vector<16xf32>
    %89 = vector.multi_reduction <add>, %84, %cst_28 [1] : vector<16x32xf32> to vector<16xf32>
    %90 = vector.shape_cast %89 : vector<16xf32> to vector<16x1xf32>
    %cst_29 = arith.constant 3.200000e+01 : f32
    %91 = vector.broadcast %cst_29 : f32 to vector<16x1xf32>
    %92 = arith.divf %90, %91 : vector<16x1xf32>
    %93 = vector.broadcast %92 : vector<16x1xf32> to vector<16x32xf32>
    %94 = arith.subf %84, %93 : vector<16x32xf32>
    %95 = arith.mulf %94, %94 : vector<16x32xf32>
    %cst_30 = arith.constant dense<0.000000e+00> : vector<16xf32>
    %96 = vector.multi_reduction <add>, %95, %cst_30 [1] : vector<16x32xf32> to vector<16xf32>
    %97 = vector.shape_cast %96 : vector<16xf32> to vector<16x1xf32>
    %cst_31 = arith.constant 3.200000e+01 : f32
    %98 = vector.broadcast %cst_31 : f32 to vector<16x1xf32>
    %99 = arith.divf %97, %98 : vector<16x1xf32>
    %100 = vector.broadcast %92 : vector<16x1xf32> to vector<16x32xf32>
    %101 = arith.subf %84, %100 : vector<16x32xf32>
    %cst_32 = arith.constant 9.99999997E-7 : f32
    %102 = vector.broadcast %cst_32 : f32 to vector<16x1xf32>
    %103 = arith.addf %99, %102 : vector<16x1xf32>
    %104 = math.rsqrt %103 : vector<16x1xf32>
    %105 = vector.broadcast %104 : vector<16x1xf32> to vector<16x32xf32>
    %106 = arith.mulf %101, %105 : vector<16x32xf32>
    %107 = vector.broadcast %86 : vector<1x32xf32> to vector<16x32xf32>
    %108 = arith.mulf %106, %107 : vector<16x32xf32>
    %109 = vector.broadcast %88 : vector<1x32xf32> to vector<16x32xf32>
    %110 = arith.addf %108, %109 : vector<16x32xf32>
    %c0_33 = arith.constant 0 : index
    %c0_34 = arith.constant 0 : index
    %c0_35 = arith.constant 0 : index
    %111 = vector.load %arg9[%c0_33, %c0_34, %c0_35] : memref<4x32x32xf32, #tpu.memory_space<vmem>>, vector<4x32x32xf32>
    %c0_36 = arith.constant 0 : index
    %c0_37 = arith.constant 0 : index
    %c0_38 = arith.constant 0 : index
    %112 = vector.load %arg10[%c0_36, %c0_37, %c0_38] : memref<4x1x32xf32, #tpu.memory_space<vmem>>, vector<4x1x32xf32>
    %c0_39 = arith.constant 0 : index
    %c0_40 = arith.constant 0 : index
    %113 = vector.load %arg4[%c0_39, %c0_40] : memref<64x16xf32, #tpu.memory_space<vmem>>, vector<64x16xf32>
    %114 = vector.extract_strided_slice %111 {offsets = [0, 0, 0], sizes = [1, 32, 32], strides = [1, 1, 1]} : vector<4x32x32xf32> to vector<1x32x32xf32>
    %115 = vector.shape_cast %114 : vector<1x32x32xf32> to vector<32x32xf32>
    %cst_41 = arith.constant dense<0.000000e+00> : vector<16x32xf32>
    %116 = tpu.matmul %110, %115, %cst_41 {dimension_numbers = #tpu.dot_dimension_numbers<[1], [0], [0], [1], [0, 0, 1, 1], [], []>} : vector<16x32xf32>, vector<32x32xf32>, vector<16x32xf32> -> vector<16x32xf32>
    %117 = vector.extract_strided_slice %112 {offsets = [0, 0, 0], sizes = [1, 1, 32], strides = [1, 1, 1]} : vector<4x1x32xf32> to vector<1x1x32xf32>
    %118 = vector.shape_cast %117 : vector<1x1x32xf32> to vector<1x32xf32>
    %119 = vector.broadcast %118 : vector<1x32xf32> to vector<16x32xf32>
    %120 = arith.addf %116, %119 : vector<16x32xf32>
    %121 = vector.extract_strided_slice %111 {offsets = [1, 0, 0], sizes = [1, 32, 32], strides = [1, 1, 1]} : vector<4x32x32xf32> to vector<1x32x32xf32>
    %122 = vector.shape_cast %121 : vector<1x32x32xf32> to vector<32x32xf32>
    %cst_42 = arith.constant dense<0.000000e+00> : vector<16x32xf32>
    %123 = tpu.matmul %1, %122, %cst_42 {dimension_numbers = #tpu.dot_dimension_numbers<[1], [0], [0], [1], [0, 0, 1, 1], [], []>} : vector<16x32xf32>, vector<32x32xf32>, vector<16x32xf32> -> vector<16x32xf32>
    %124 = vector.extract_strided_slice %112 {offsets = [1, 0, 0], sizes = [1, 1, 32], strides = [1, 1, 1]} : vector<4x1x32xf32> to vector<1x1x32xf32>
    %125 = vector.shape_cast %124 : vector<1x1x32xf32> to vector<1x32xf32>
    %126 = vector.broadcast %125 : vector<1x32xf32> to vector<16x32xf32>
    %127 = arith.addf %123, %126 : vector<16x32xf32>
    %128 = vector.extract_strided_slice %111 {offsets = [2, 0, 0], sizes = [1, 32, 32], strides = [1, 1, 1]} : vector<4x32x32xf32> to vector<1x32x32xf32>
    %129 = vector.shape_cast %128 : vector<1x32x32xf32> to vector<32x32xf32>
    %cst_43 = arith.constant dense<0.000000e+00> : vector<16x32xf32>
    %130 = tpu.matmul %1, %129, %cst_43 {dimension_numbers = #tpu.dot_dimension_numbers<[1], [0], [0], [1], [0, 0, 1, 1], [], []>} : vector<16x32xf32>, vector<32x32xf32>, vector<16x32xf32> -> vector<16x32xf32>
    %131 = vector.extract_strided_slice %112 {offsets = [2, 0, 0], sizes = [1, 1, 32], strides = [1, 1, 1]} : vector<4x1x32xf32> to vector<1x1x32xf32>
    %132 = vector.shape_cast %131 : vector<1x1x32xf32> to vector<1x32xf32>
    %133 = vector.broadcast %132 : vector<1x32xf32> to vector<16x32xf32>
    %134 = arith.addf %130, %133 : vector<16x32xf32>
    %135 = tpu.concatenate %120, %120, %120, %120 in 0 : vector<16x32xf32>, vector<16x32xf32>, vector<16x32xf32>, vector<16x32xf32> -> vector<64x32xf32>
    %136 = arith.mulf %135, %2 : vector<64x32xf32>
    %cst_44 = arith.constant dense<0.000000e+00> : vector<64x16xf32>
    %137 = tpu.matmul %136, %127, %cst_44 {dimension_numbers = #tpu.dot_dimension_numbers<[1], [1], [0], [0], [0, 0, 1, 0], [], []>} : vector<64x32xf32>, vector<16x32xf32>, vector<64x16xf32> -> vector<64x16xf32>
    %138 = arith.addf %137, %113 : vector<64x16xf32>
    %cst_45 = arith.constant dense<0xFF800000> : vector<64xf32>
    %139 = vector.multi_reduction <maximumf>, %138, %cst_45 [1] : vector<64x16xf32> to vector<64xf32>
    %140 = vector.shape_cast %139 : vector<64xf32> to vector<64x1xf32>
    %141 = vector.broadcast %140 : vector<64x1xf32> to vector<64x16xf32>
    %142 = arith.subf %138, %141 : vector<64x16xf32>
    %143 = math.exp %142 : vector<64x16xf32>
    %cst_46 = arith.constant dense<0.000000e+00> : vector<64xf32>
    %144 = vector.multi_reduction <add>, %143, %cst_46 [1] : vector<64x16xf32> to vector<64xf32>
    %145 = vector.shape_cast %144 : vector<64xf32> to vector<64x1xf32>
    %146 = tpu.reciprocal %145 {approx = true} : vector<64x1xf32> -> vector<64x1xf32>
    %147 = vector.broadcast %146 : vector<64x1xf32> to vector<64x16xf32>
    %148 = arith.mulf %143, %147 : vector<64x16xf32>
    %cst_47 = arith.constant dense<0.000000e+00> : vector<64x32xf32>
    %149 = tpu.matmul %148, %134, %cst_47 {dimension_numbers = #tpu.dot_dimension_numbers<[1], [0], [0], [1], [0, 0, 1, 1], [], []>} : vector<64x16xf32>, vector<16x32xf32>, vector<64x32xf32> -> vector<64x32xf32>
    %150 = arith.mulf %149, %2 : vector<64x32xf32>
    %151 = vector.extract_strided_slice %150 {offsets = [0, 0], sizes = [16, 32], strides = [1, 1]} : vector<64x32xf32> to vector<16x32xf32>
    %152 = vector.extract_strided_slice %150 {offsets = [16, 0], sizes = [16, 32], strides = [1, 1]} : vector<64x32xf32> to vector<16x32xf32>
    %153 = arith.addf %151, %152 : vector<16x32xf32>
    %154 = vector.extract_strided_slice %150 {offsets = [32, 0], sizes = [16, 32], strides = [1, 1]} : vector<64x32xf32> to vector<16x32xf32>
    %155 = arith.addf %153, %154 : vector<16x32xf32>
    %156 = vector.extract_strided_slice %150 {offsets = [48, 0], sizes = [16, 32], strides = [1, 1]} : vector<64x32xf32> to vector<16x32xf32>
    %157 = arith.addf %155, %156 : vector<16x32xf32>
    %158 = vector.extract_strided_slice %111 {offsets = [3, 0, 0], sizes = [1, 32, 32], strides = [1, 1, 1]} : vector<4x32x32xf32> to vector<1x32x32xf32>
    %159 = vector.shape_cast %158 : vector<1x32x32xf32> to vector<32x32xf32>
    %cst_48 = arith.constant dense<0.000000e+00> : vector<16x32xf32>
    %160 = tpu.matmul %157, %159, %cst_48 {dimension_numbers = #tpu.dot_dimension_numbers<[1], [0], [0], [1], [0, 0, 1, 1], [], []>} : vector<16x32xf32>, vector<32x32xf32>, vector<16x32xf32> -> vector<16x32xf32>
    %161 = vector.extract_strided_slice %112 {offsets = [3, 0, 0], sizes = [1, 1, 32], strides = [1, 1, 1]} : vector<4x1x32xf32> to vector<1x1x32xf32>
    %162 = vector.shape_cast %161 : vector<1x1x32xf32> to vector<1x32xf32>
    %163 = vector.broadcast %162 : vector<1x32xf32> to vector<16x32xf32>
    %164 = arith.addf %160, %163 : vector<16x32xf32>
    %165 = arith.addf %84, %164 : vector<16x32xf32>
    %166 = vector.extract_strided_slice %3 {offsets = [4, 0, 0], sizes = [1, 1, 32], strides = [1, 1, 1]} : vector<6x1x32xf32> to vector<1x1x32xf32>
    %167 = vector.shape_cast %166 : vector<1x1x32xf32> to vector<1x32xf32>
    %168 = vector.extract_strided_slice %3 {offsets = [5, 0, 0], sizes = [1, 1, 32], strides = [1, 1, 1]} : vector<6x1x32xf32> to vector<1x1x32xf32>
    %169 = vector.shape_cast %168 : vector<1x1x32xf32> to vector<1x32xf32>
    %cst_49 = arith.constant dense<0.000000e+00> : vector<16xf32>
    %170 = vector.multi_reduction <add>, %165, %cst_49 [1] : vector<16x32xf32> to vector<16xf32>
    %171 = vector.shape_cast %170 : vector<16xf32> to vector<16x1xf32>
    %cst_50 = arith.constant 3.200000e+01 : f32
    %172 = vector.broadcast %cst_50 : f32 to vector<16x1xf32>
    %173 = arith.divf %171, %172 : vector<16x1xf32>
    %174 = vector.broadcast %173 : vector<16x1xf32> to vector<16x32xf32>
    %175 = arith.subf %165, %174 : vector<16x32xf32>
    %176 = arith.mulf %175, %175 : vector<16x32xf32>
    %cst_51 = arith.constant dense<0.000000e+00> : vector<16xf32>
    %177 = vector.multi_reduction <add>, %176, %cst_51 [1] : vector<16x32xf32> to vector<16xf32>
    %178 = vector.shape_cast %177 : vector<16xf32> to vector<16x1xf32>
    %cst_52 = arith.constant 3.200000e+01 : f32
    %179 = vector.broadcast %cst_52 : f32 to vector<16x1xf32>
    %180 = arith.divf %178, %179 : vector<16x1xf32>
    %181 = vector.broadcast %173 : vector<16x1xf32> to vector<16x32xf32>
    %182 = arith.subf %165, %181 : vector<16x32xf32>
    %cst_53 = arith.constant 9.99999997E-7 : f32
    %183 = vector.broadcast %cst_53 : f32 to vector<16x1xf32>
    %184 = arith.addf %180, %183 : vector<16x1xf32>
    %185 = math.rsqrt %184 : vector<16x1xf32>
    %186 = vector.broadcast %185 : vector<16x1xf32> to vector<16x32xf32>
    %187 = arith.mulf %182, %186 : vector<16x32xf32>
    %188 = vector.broadcast %167 : vector<1x32xf32> to vector<16x32xf32>
    %189 = arith.mulf %187, %188 : vector<16x32xf32>
    %190 = vector.broadcast %169 : vector<1x32xf32> to vector<16x32xf32>
    %191 = arith.addf %189, %190 : vector<16x32xf32>
    %c0_54 = arith.constant 0 : index
    %c0_55 = arith.constant 0 : index
    %192 = vector.load %arg11[%c0_54, %c0_55] : memref<32x64xf32, #tpu.memory_space<vmem>>, vector<32x64xf32>
    %cst_56 = arith.constant dense<0.000000e+00> : vector<16x64xf32>
    %193 = tpu.matmul %191, %192, %cst_56 {dimension_numbers = #tpu.dot_dimension_numbers<[1], [0], [0], [1], [0, 0, 1, 1], [], []>} : vector<16x32xf32>, vector<32x64xf32>, vector<16x64xf32> -> vector<16x64xf32>
    %c0_57 = arith.constant 0 : index
    %c0_58 = arith.constant 0 : index
    %194 = vector.load %arg12[%c0_57, %c0_58] : memref<1x64xf32, #tpu.memory_space<vmem>>, vector<1x64xf32>
    %195 = vector.broadcast %194 : vector<1x64xf32> to vector<16x64xf32>
    %196 = arith.addf %193, %195 : vector<16x64xf32>
    %c0_59 = arith.constant 0 : index
    %c0_60 = arith.constant 0 : index
    %197 = vector.load %arg13[%c0_59, %c0_60] : memref<64x32xf32, #tpu.memory_space<vmem>>, vector<64x32xf32>
    %cst_61 = arith.constant dense<0.000000e+00> : vector<16x32xf32>
    %198 = tpu.matmul %196, %197, %cst_61 {dimension_numbers = #tpu.dot_dimension_numbers<[1], [0], [0], [1], [0, 0, 1, 1], [], []>} : vector<16x64xf32>, vector<64x32xf32>, vector<16x32xf32> -> vector<16x32xf32>
    %199 = arith.addf %165, %198 : vector<16x32xf32>
    %c0_62 = arith.constant 0 : index
    %c0_63 = arith.constant 0 : index
    %200 = vector.load %arg14[%c0_62, %c0_63] : memref<1x32xf32, #tpu.memory_space<vmem>>, vector<1x32xf32>
    %201 = vector.broadcast %200 : vector<1x32xf32> to vector<16x32xf32>
    %202 = arith.addf %199, %201 : vector<16x32xf32>
    %c0_64 = arith.constant 0 : index
    %c0_65 = arith.constant 0 : index
    %203 = vector.load %arg15[%c0_64, %c0_65] : memref<16x32xf32, #tpu.memory_space<vmem>>, vector<16x32xf32>
    tpu.vector_store %arg15[%c0_64, %c0_65], %202 {strides = array<i32>} : memref<16x32xf32, #tpu.memory_space<vmem>>, vector<16x32xf32>,
    return
  }
  func.func @transform_0(%arg0: i32) -> (i32, i32) {
    %c0_i32 = arith.constant 0 : i32
    %c0_i32_0 = arith.constant 0 : i32
    return %arg0, %c0_i32 : i32, i32
  }
  func.func @transform_1(%arg0: i32) -> (i32, i32) {
    %c0_i32 = arith.constant 0 : i32
    %c0_i32_0 = arith.constant 0 : i32
    return %arg0, %c0_i32 : i32, i32
  }
  func.func @transform_2(%arg0: i32) -> (i32, i32) {
    %c0_i32 = arith.constant 0 : i32
    %c0_i32_0 = arith.constant 0 : i32
    return %arg0, %c0_i32 : i32, i32
  }
  func.func @transform_3(%arg0: i32) -> (i32, i32) {
    %c0_i32 = arith.constant 0 : i32
    %c0_i32_0 = arith.constant 0 : i32
    return %arg0, %c0_i32 : i32, i32
  }
  func.func @transform_4(%arg0: i32) -> (i32, i32) {
    %c0_i32 = arith.constant 0 : i32
    %c0_i32_0 = arith.constant 0 : i32
    %c0_i32_1 = arith.constant 0 : i32
    return %c0_i32, %c0_i32_0 : i32, i32
  }
  func.func @transform_5(%arg0: i32) -> (i32, i32, i32) {
    %c0_i32 = arith.constant 0 : i32
    %c0_i32_0 = arith.constant 0 : i32
    %c0_i32_1 = arith.constant 0 : i32
    %c0_i32_2 = arith.constant 0 : i32
    return %c0_i32, %c0_i32_0, %c0_i32_1 : i32, i32, i32
  }
  func.func @transform_6(%arg0: i32) -> (i32, i32, i32) {
    %c0_i32 = arith.constant 0 : i32
    %c0_i32_0 = arith.constant 0 : i32
    %c0_i32_1 = arith.constant 0 : i32
    %c0_i32_2 = arith.constant 0 : i32
    return %c0_i32, %c0_i32_0, %c0_i32_1 : i32, i32, i32
  }
  func.func @transform_7(%arg0: i32) -> (i32, i32, i32) {
    %c0_i32 = arith.constant 0 : i32
    %c0_i32_0 = arith.constant 0 : i32
    %c0_i32_1 = arith.constant 0 : i32
    %c0_i32_2 = arith.constant 0 : i32
    return %c0_i32, %c0_i32_0, %c0_i32_1 : i32, i32, i32
  }
  func.func @transform_8(%arg0: i32) -> (i32, i32, i32) {
    %c0_i32 = arith.constant 0 : i32
    %c0_i32_0 = arith.constant 0 : i32
    %c0_i32_1 = arith.constant 0 : i32
    %c0_i32_2 = arith.constant 0 : i32
    return %c0_i32, %c0_i32_0, %c0_i32_1 : i32, i32, i32
  }
  func.func @transform_9(%arg0: i32) -> (i32, i32, i32) {
    %c0_i32 = arith.constant 0 : i32
    %c0_i32_0 = arith.constant 0 : i32
    %c0_i32_1 = arith.constant 0 : i32
    %c0_i32_2 = arith.constant 0 : i32
    return %c0_i32, %c0_i32_0, %c0_i32_1 : i32, i32, i32
  }
  func.func @transform_10(%arg0: i32) -> (i32, i32) {
    %c0_i32 = arith.constant 0 : i32
    %c0_i32_0 = arith.constant 0 : i32
    %c0_i32_1 = arith.constant 0 : i32
    return %c0_i32, %c0_i32_0 : i32, i32
  }
  func.func @transform_11(%arg0: i32) -> (i32, i32) {
    %c0_i32 = arith.constant 0 : i32
    %c0_i32_0 = arith.constant 0 : i32
    %c0_i32_1 = arith.constant 0 : i32
    return %c0_i32, %c0_i32_0 : i32, i32
  }
  func.func @transform_12(%arg0: i32) -> (i32, i32) {
    %c0_i32 = arith.constant 0 : i32
    %c0_i32_0 = arith.constant 0 : i32
    %c0_i32_1 = arith.constant 0 : i32
    return %c0_i32, %c0_i32_0 : i32, i32
  }
  func.func @transform_13(%arg0: i32) -> (i32, i32) {
    %c0_i32 = arith.constant 0 : i32
    %c0_i32_0 = arith.constant 0 : i32
    %c0_i32_1 = arith.constant 0 : i32
    return %c0_i32, %c0_i32_0 : i32, i32
  }
  func.func @transform_14(%arg0: i32) -> (i32, i32) {
    %c0_i32 = arith.constant 0 : i32
    %c0_i32_0 = arith.constant 0 : i32
    return %arg0, %c0_i32 : i32, i32
  }
}

</mosaic_0001>

<bundles_post_ra>
// kernel: decoder_layer_run.1
= control target key start
LH: loop header
LB: loop body
LE: loop exit
PB: predicated region body
PF: predicated region fallthrough
CT: control target
= control target key end

     0   :  { %19 = vsyncpa [#allocation3], 0  ;;  %s3110_s0 = inlined_call_operand.hbm [shape: f32[16,32], index: 0, kind: input, shape index: {}]   ;;  %s3111_s1 = inlined_call_operand.hbm [shape: f32[16,32], index: 1, kind: input, shape index: {}]   ;;  %s3112_s2 = inlined_call_operand.vmem [shape: f32[64,16], index: 2, kind: input, shape index: {}]   ;;  %s3113_s3 = inlined_call_operand.vmem [shape: f32[64,16], index: 3, kind: input, shape index: {}]   ;;  %s3114_s4 = inlined_call_operand.vmem [shape: f32[64,32], index: 4, kind: input, shape index: {}]   ;;  %s3115_s5 = inlined_call_operand.vmem [shape: f32[6,1,32], index: 5, kind: input, shape index: {}]   ;;  %s3116_s6 = inlined_call_operand.vmem [shape: f32[4,32,32], index: 6, kind: input, shape index: {}]   ;;  %s3117_s7 = inlined_call_operand.vmem [shape: f32[4,1,32], index: 7, kind: input, shape index: {}]   ;;  %s3118_s8 = inlined_call_operand.vmem [shape: f32[4,32,32], index: 8, kind: input, shape index: {}]   ;;  %s3119_s9 = inlined_call_operand.vmem [shape: f32[4,1,32], index: 9, kind: input, shape index: {}]   ;;  %s3120_s10 = inlined_call_operand.vmem [shape: f32[32,64], index: 10, kind: input, shape index: {}]   ;;  %s3121_s11 = inlined_call_operand.vmem [shape: f32[1,64], index: 11, kind: input, shape index: {}]   ;;  %s3122_s12 = inlined_call_operand.vmem [shape: f32[64,32], index: 12, kind: input, shape index: {}]   ;;  %s3123_s13 = inlined_call_operand.vmem [shape: f32[1,32], index: 13, kind: input, shape index: {}]   ;;  %s3124_s14 = inlined_call_operand.hbm [shape: f32[16,32], index: 14, kind: output, shape index: {}]  }
   0x1   :  { %20 = vsyncpa [#allocation6], 0 }
   0x2   :  { %21 = vsyncpa [#allocation4], 0  ;;  %s2541_s29 = smov [#allocation2]   ;;  %s2469_s17 = scalar_lea.hbm %s3110_s0, 256 }
   0x3   :  { %s27_s30 = sshll.u32 %s2541_s29, 4  ;;  %p2470_p0 = scmp.ne.s32.totalorder %s3110_s0, %s2469_s17  ;;  %s28_s30 = int_to_ptr.vmem [resolvable:$true] %s27_s30 }
   0x4   :  { %p2473_p1 = scmp.lt.u32.totalorder %s2469_s17, %s3110_s0 }
   0x6   :  { %p2475_p2 = pnand %p2473_p1, %p2470_p0 }
   0x8   :  { %2478 = shalt.err (!%p2475_p2)
}
   0x9   :  { %s2479_s22 = scalar_lea.vmem %s28_s30, 256  ;;  %p2484_p4 = scmp.lt.s32.totalorder %s28_s30, %s28_s30 }
   0xa   :  { %p2480_p3 = scmp.ne.s32.totalorder %s28_s30, %s2479_s22  ;;  %p2485_p5 = scmp.lt.s32.totalorder %s2479_s22, %s2479_s22 }
   0xc   :  { %p2486_p6 = por %p2485_p5, %p2484_p4 }
   0xe   :  { %p2487_p7 = pnand %p2486_p6, %p2480_p3 }
  0x10   :  { %2490 = shalt.err (!%p2487_p7)
}
  0x11   :  { %s2542_s23 = smov 128   ;;  %s2543_s24 = smov 8  }
  0x12   :  { %33 = dma.hbm_to_vmem [thread:$0]  %s3110_s0, 256, %s28_s30, [#allocation3], %s2542_s23, %s2542_s23, %s2543_s24  }
  0x13   :  { %s2544_s27 = smov [#allocation5]   ;;  %s2491_s16 = scalar_lea.hbm %s3111_s1, 256 }
  0x14   :  { %s39_s28 = sshll.u32 %s2544_s27, 4  ;;  %p2492_p8 = scmp.ne.s32.totalorder %s3111_s1, %s2491_s16  ;;  %s40_s28 = int_to_ptr.vmem [resolvable:$true] %s39_s28 }
  0x15   :  { %p2495_p9 = scmp.lt.u32.totalorder %s2491_s16, %s3111_s1 }
  0x17   :  { %p2497_p10 = pnand %p2495_p9, %p2492_p8 }
  0x19   :  { %2500 = shalt.err (!%p2497_p10)
}
  0x1a   :  { %s2501_s21 = scalar_lea.vmem %s40_s28, 256  ;;  %p2506_p12 = scmp.lt.s32.totalorder %s40_s28, %s40_s28 }
  0x1b   :  { %p2502_p11 = scmp.ne.s32.totalorder %s40_s28, %s2501_s21  ;;  %p2507_p13 = scmp.lt.s32.totalorder %s2501_s21, %s2501_s21 }
  0x1d   :  { %p2508_p0 = por %p2507_p13, %p2506_p12 }
  0x1f   :  { %p2509_p1 = pnand %p2508_p0, %p2502_p11 }
  0x21   :  { %2512 = shalt.err (!%p2509_p1)
}
  0x22   :  { %45 = dma.hbm_to_vmem [thread:$0]  %s3111_s1, 256, %s40_s28, [#allocation6], %s2542_s23, %s2542_s23, %s2543_s24  }
  0x23   :  { %2535 = dma.done.wait [#allocation3], 256  }
  0x24   :  { %2536 = vsyncadd [#allocation3], 4294967040 }
  0x25   :  { %2537 = dma.done.wait [#allocation6], 256  }
  0x26   :  { %2538 = vsyncadd [#allocation6], 4294967040  ;;  %vm94_vm0 = vcmask 261120   ;;  %v2651_v0 = vld [vmem:[#allocation2] sm:$0xff]  ;;  %v2653_v1 = vld [vmem:[#allocation2 + $0x8] sm:$0xff]  ;;  %vm558_vm2 = vcmask 130048  }
  0x27   :  { %v95_v2 = vsel %vm94_vm0, %v2651_v0, 0.0  ;;  %v98_v3 = vsel %vm94_vm0, %v2653_v1, 0.0  ;;  %v138_v14 = vld [vmem:[%s3116_s6] sm:$0xff]  ;;  %v139_v15 = vld [vmem:[%s3116_s6 + $0x8] sm:$0xff]  ;;  %v140_v19 = vld [vmem:[%s3116_s6 + $0x10] sm:$0xff]  ;;  %vm1809_vm3 = vcmask 523264  }
  0x28   :  { %96 = vadd.xlane.f32.xlu0 %v95_v2  ;;  %v146_v16 = vld [vmem:[%s3116_s6 + $0x40] sm:$0xff]  ;;  %v2280_v17 = vpack.c.bf16 %v139_v15, %v138_v14  ;;  %v147_v18 = vld [vmem:[%s3116_s6 + $0x48] sm:$0xff]  ;;  %v141_v20 = vld [vmem:[%s3116_s6 + $0x18] sm:$0xff] }
  0x29   :  { %v2296_v21 = vpack.c.bf16 %v147_v18, %v146_v16  ;;  %v2284_v22 = vpack.c.bf16 %v141_v20, %v140_v19  ;;  %v148_v23 = vld [vmem:[%s3116_s6 + $0x50] sm:$0xff]  ;;  %v149_v24 = vld [vmem:[%s3116_s6 + $0x58] sm:$0xff]  ;;  %v142_v26 = vld [vmem:[%s3116_s6 + $0x20] sm:$0xff] }
  0x2a   :  { %2281 = vmatprep.subr.bf16.mxu1 %v2280_v17  ;;  %v2300_v25 = vpack.c.bf16 %v149_v24, %v148_v23  ;;  %v143_v27 = vld [vmem:[%s3116_s6 + $0x28] sm:$0xff]  ;;  %v1922_v36 = vld [vmem:[%s3115_s5] ss:$0 sm:$0xff]  ;;  %v1923_v38 = vld [vmem:[%s3115_s5 + $0x1] ss:$0 sm:$0xff] }
  0x2b   :  { %2283 = vmatpush3.bf16.msra.mxu1 %v2280_v17  ;;  %2297 = vmatprep.subr.bf16.mxu0 %v2296_v21  ;;  %v2288_v28 = vpack.c.bf16 %v143_v27, %v142_v26  ;;  %v144_v43 = vld [vmem:[%s3116_s6 + $0x30] sm:$0xff]  ;;  %v145_v44 = vld [vmem:[%s3116_s6 + $0x38] sm:$0xff]  ;;  %v1930_v48 = vld [vmem:[%s3117_s7 + $0x2] ss:$0 sm:$0xff] }
  0x2c   :  { %99 = vadd.xlane.f32.xlu0 %v98_v3  ;;  %2299 = vmatpush3.bf16.msra.mxu0 %v2296_v21  ;;  %v2292_v47 = vpack.c.bf16 %v145_v44, %v144_v43  ;;  %v1924_v49 = vld [vmem:[%s3117_s7] ss:$0 sm:$0xff]  ;;  %v1927_v60 = vld [vmem:[%s3117_s7 + $0x1] ss:$0 sm:$0xff]  ;;  %vm2729_vm1 = vmpackc.low %vm94_vm0, %vm94_vm0 }
  0x2d   :  { %2285 = vmatprep.subr.bf16.mxu1 %v2284_v22  ;;  %2301 = vmatprep.subr.bf16.mxu0 %v2300_v25  ;;  %v2720_v55 = vld [vmem:[%s3114_s4] sm:$0xff]  ;;  %v2766_v14 = vld [vmem:[%s3114_s4 + $0x28] sm:$0xff]  ;;  %v2772_v15 = vld [vmem:[%s3114_s4 + $0x30] sm:$0xff] }
  0x2e   :  { %v2780_v18 = vld [vmem:[%s3114_s4 + $0x38] sm:$0xff]  ;;  %v159_v20 = vld [vmem:[%s3112_s2 + $0x8] sm:$0xff]  ;;  %v158_v21 = vld [vmem:[%s3112_s2] sm:$0xff] }
  0x2f   :  { %2287 = vmatpush3.bf16.msra.mxu1 %v2284_v22  ;;  %v161_v26 = vld [vmem:[%s3112_s2 + $0x18] sm:$0xff]  ;;  %v164_v44 = vld [vmem:[%s3112_s2 + $0x30] sm:$0xff] }
  0x30   :  { %2303 = vmatpush3.bf16.msra.mxu0 %v2300_v25  ;;  %2289 = vmatprep.subr.bf16.mxu1 %v2288_v28 }
  0xb5   :  { %v97_v4 = vpop.xlane.xlu0 %96 }
  0xb6   :  { %v102_v5 = vmul.f32 0.03125, %v97_v4 }
  0xb8   :  { %v104_v6 = vsub.f32 %v2651_v0, %v102_v5 }
  0xb9   :  { %v100_v7 = vpop.xlane.xlu0 %99 }
  0xba   :  { %v103_v8 = vmul.f32 0.03125, %v100_v7  ;;  %v106_v9 = vmul.f32 %v104_v6, %v104_v6  ;;  %v2745_v7 = vld [vmem:[%s3114_s4 + $0x10] sm:$0xff] }
  0xbc   :  { %v105_v10 = vsub.f32 %v2653_v1, %v103_v8  ;;  %v108_v11 = vsel %vm94_vm0, %v106_v9, 0.0 }
  0xbd   :  { %109 = vadd.xlane.f32.xlu1 %v108_v11  ;;  %v2758_v11 = vld [vmem:[%s3114_s4 + $0x20] sm:$0xff] }
  0xbe   :  { %v107_v12 = vmul.f32 %v105_v10, %v105_v10 }
  0xc0   :  { %v111_v13 = vsel %vm94_vm0, %v107_v12, 0.0 }
  0xc1   :  { %112 = vadd.xlane.f32.xlu1 %v111_v13 }
 0x14a   :  { %v110_v29 = vpop.xlane.xlu1 %109 }
 0x14b   :  { %v114_v30 = vmul.f32 0.03125, %v110_v29 }
 0x14d   :  { %v116_v31 = vadd.f32 1e-06, %v114_v30 }
 0x14e   :  { %v113_v32 = vpop.xlane.xlu1 %112 }
 0x14f   :  { %2393 = vrsqrt.f32 %v116_v31  ;;  %v115_v33 = vmul.f32 0.03125, %v113_v32 }
 0x151   :  { %v117_v34 = vadd.f32 1e-06, %v115_v33 }
 0x153   :  { %2395 = vrsqrt.f32 %v117_v34  ;;  %v163_v34 = vld [vmem:[%s3112_s2 + $0x28] sm:$0xff] }
 0x159   :  { %v2394_v35 = vpop.eup %2393 }
 0x15a   :  { %v120_v37 = vmul.f32 %v2394_v35, %v104_v6  ;;  %v2740_v6 = vld [vmem:[%s3114_s4 + $0x8] sm:$0xff] }
 0x15c   :  { %v128_v39 = vmul.f32 %v1922_v36, %v120_v37 }
 0x15d   :  { %v2396_v40 = vpop.eup %2395 }
 0x15e   :  { %v121_v41 = vmul.f32 %v2396_v40, %v105_v10  ;;  %v136_v42 = vadd.f32 %v1923_v38, %v128_v39  ;;  %v2752_v10 = vld [vmem:[%s3114_s4 + $0x18] sm:$0xff] }
 0x160   :  { %v129_v45 = vmul.f32 %v1922_v36, %v121_v41  ;;  %2106 = vmatprep.mubr.msk.f32.mxu1 %vm94_vm0, %v136_v42  ;;  %2128 = vmatprep.mubr.msk.f32.mxu0 %vm94_vm0, %v136_v42  ;;  %v162_v36 = vld [vmem:[%s3112_s2 + $0x20] sm:$0xff] }
 0x162   :  { %v137_v46 = vadd.f32 %v1923_v38, %v129_v45 }
 0x164   :  { %2107 = vmatmul.mubr.msk.f32.vlgmr.msra.gmra.mrb[0].mxu1 %vm94_vm0, %v137_v46  ;;  %2129 = vmatmul.mubr.msk.f32.vlgmr.msra.gmra.mrb[0].mxu0 %vm94_vm0, %v137_v46 }
 0x165   :  { %2291 = vmatpush3.bf16.msra.mxu1 %v2288_v28  ;;  %2117 = vmatprep.mubr.msk.f32.mxu1 %vm94_vm0, %v136_v42  ;;  %v160_v28 = vld [vmem:[%s3112_s2 + $0x10] sm:$0xff]  ;;  %v165_v42 = vld [vmem:[%s3112_s2 + $0x38] sm:$0xff] }
 0x166   :  { %2293 = vmatprep.subr.bf16.mxu1 %v2292_v47 }
 0x169   :  { %2295 = vmatpush3.bf16.msra.mxu1 %v2292_v47 }
 0x16c   :  { %2118 = vmatmul.mubr.msk.f32.vlgmr.msra.gmra.mrb[2].mxu1 %vm94_vm0, %v137_v46 }
 0x237   :  { %v2108_v50 = vpop.f32.mrb[0].mxu1  ;;  %v2130_v51 = vpop.f32.mrb[0].mxu0 }
 0x238   :  { %v412_v52 = vadd.f32 %v2130_v51, %v1930_v48  ;;  %v244_v53 = vpop.f32.mrb[1].mxu1  ;;  %v406_v54 = vpop.f32.mrb[1].mxu0  ;;  %v250_v5 = vadd.f32 %v2108_v50, %v1924_v49 }
 0x239   :  { %v245_v56 = vadd.f32 %v1924_v49, %v244_v53  ;;  %v407_v57 = vadd.f32 %v1930_v48, %v406_v54 }
 0x23a   :  { %v416_v8 = vmul.f32 %v250_v5, %v2740_v6  ;;  %v418_v12 = vmul.f32 %v250_v5, %v2752_v10  ;;  %v420_v16 = vmul.f32 %v250_v5, %v2766_v14  ;;  %v422_v19 = vmul.f32 %v250_v5, %v2780_v18 }
 0x23b   :  { %v2310_v58 = vpack.c.bf16 %v412_v52, %v407_v57  ;;  %v415_v59 = vmul.f32 %v245_v56, %v2720_v55  ;;  %v417_v9 = vmul.f32 %v245_v56, %v2745_v7  ;;  %v419_v13 = vmul.f32 %v245_v56, %v2758_v11 }
 0x23c   :  { %v421_v17 = vmul.f32 %v245_v56, %v2772_v15 }
 0x23d   :  { %2135 = vmatprep.mubr.msk.f32.mxu1 %vm94_vm0, %v415_v59  ;;  %2311 = vmatprep.subr.bf16.mxu0 %v2310_v58 }
 0x23e   :  { %2313 = vmatpush3.bf16.msra.mxu0 %v2310_v58 }
 0x23f   :  { %v2119_v61 = vpop.f32.mrb[2].mxu1 }
 0x240   :  { %v331_v62 = vadd.f32 %v2119_v61, %v1927_v60  ;;  %v325_v63 = vpop.f32.mrb[3].mxu1 }
 0x241   :  { %v326_v2 = vadd.f32 %v1927_v60, %v325_v63 }
 0x243   :  { %v2304_v4 = vpack.c.bf16 %v331_v62, %v326_v2 }
 0x245   :  { %2306 = vmatprep.subr.msk.bf16.mxu1 %vm2729_vm1, %v2304_v4 }
 0x246   :  { %2309 = vmatpush3.bf16.xpose.msk.msra.mxu1 %vm2729_vm1, %v2304_v4 }
 0x24d   :  { %2136 = vmatmul.mubr.msk.f32.vlgmr.msra.gmra.mrb[4].mxu1 %vm94_vm0, %v416_v8 }
 0x24e   :  { %2138 = vmatprep.mubr.msk.f32.mxu1 %vm94_vm0, %v417_v9 }
 0x251   :  { %2139 = vmatmul.mubr.msk.f32.gmra.mrb[6].mxu1 %vm94_vm0, %v418_v12 }
 0x252   :  { %2141 = vmatprep.mubr.msk.f32.mxu1 %vm94_vm0, %v419_v13 }
 0x255   :  { %2142 = vmatmul.mubr.msk.f32.gmra.mrb[8].mxu1 %vm94_vm0, %v420_v16 }
 0x256   :  { %2144 = vmatprep.mubr.msk.f32.mxu1 %vm94_vm0, %v421_v17 }
 0x259   :  { %2145 = vmatmul.mubr.msk.f32.gmra.mrb[10].mxu1 %vm94_vm0, %v422_v19 }
 0x320   :  { %v2137_v22 = vpop.f32.mrb[4].mxu1 }
 0x321   :  { %v525_v23 = vadd.f32 %v2137_v22, %v159_v20  ;;  %v519_v24 = vpop.f32.mrb[5].mxu1 }
 0x322   :  { %v520_v25 = vadd.f32 %v519_v24, %v158_v21 }
 0x323   :  { %v562_v27 = vsel %vm558_vm2, %v525_v23, -inf }
 0x324   :  { %563 = vmax.xlane.f32.xlu1 %v562_v27  ;;  %v2140_v29 = vpop.f32.mrb[6].mxu1  ;;  %v559_v30 = vsel %vm558_vm2, %v520_v25, -inf }
 0x325   :  { %v535_v31 = vadd.f32 %v2140_v29, %v161_v26  ;;  %v529_v32 = vpop.f32.mrb[7].mxu1  ;;  %560 = vmax.xlane.f32.xlu0 %v559_v30 }
 0x326   :  { %v530_v33 = vadd.f32 %v529_v32, %v160_v28 }
 0x327   :  { %v568_v35 = vsel %vm558_vm2, %v535_v31, -inf }
 0x328   :  { %569 = vmax.xlane.f32.xlu1 %v568_v35  ;;  %v2143_v37 = vpop.f32.mrb[8].mxu1  ;;  %v565_v38 = vsel %vm558_vm2, %v530_v33, -inf }
 0x329   :  { %v545_v39 = vadd.f32 %v2143_v37, %v163_v34  ;;  %v539_v40 = vpop.f32.mrb[9].mxu1  ;;  %566 = vmax.xlane.f32.xlu0 %v565_v38 }
 0x32a   :  { %v540_v41 = vadd.f32 %v539_v40, %v162_v36 }
 0x32b   :  { %v574_v43 = vsel %vm558_vm2, %v545_v39, -inf }
 0x32c   :  { %575 = vmax.xlane.f32.xlu1 %v574_v43  ;;  %v2146_v45 = vpop.f32.mrb[10].mxu1  ;;  %v571_v46 = vsel %vm558_vm2, %v540_v41, -inf }
 0x32d   :  { %v555_v47 = vadd.f32 %v2146_v45, %v165_v42  ;;  %v549_v48 = vpop.f32.mrb[11].mxu1  ;;  %572 = vmax.xlane.f32.xlu0 %v571_v46 }
 0x32e   :  { %v550_v49 = vadd.f32 %v549_v48, %v164_v44 }
 0x32f   :  { %v580_v50 = vsel %vm558_vm2, %v555_v47, -inf }
 0x330   :  { %581 = vmax.xlane.f32.xlu1 %v580_v50  ;;  %v577_v51 = vsel %vm558_vm2, %v550_v49, -inf }
 0x331   :  { %578 = vmax.xlane.f32.xlu0 %v577_v51 }
 0x3b1   :  { %v564_v52 = vpop.xlane.xlu1 %563 }
 0x3b2   :  { %v584_v53 = vsub.f32 %v525_v23, %v564_v52  ;;  %v561_v54 = vpop.xlane.xlu0 %560 }
 0x3b3   :  { %v583_v56 = vsub.f32 %v520_v25, %v561_v54 }
 0x3b4   :  { %v593_v57 = vmul.f32 1.442695, %v584_v53 }
 0x3b5   :  { %v591_v58 = vmul.f32 1.442695, %v583_v56  ;;  %v570_v59 = vpop.xlane.xlu1 %569 }
 0x3b6   :  { %2397 = vpow2.f32 %v593_v57  ;;  %v586_v60 = vsub.f32 %v535_v31, %v570_v59  ;;  %v567_v61 = vpop.xlane.xlu0 %566 }
 0x3b7   :  { %2399 = vpow2.f32 %v591_v58  ;;  %v585_v62 = vsub.f32 %v530_v33, %v567_v61 }
 0x3b8   :  { %v597_v63 = vmul.f32 1.442695, %v586_v60 }
 0x3b9   :  { %v595_v2 = vmul.f32 1.442695, %v585_v62  ;;  %v576_v4 = vpop.xlane.xlu1 %575 }
 0x3ba   :  { %2401 = vpow2.f32 %v597_v63  ;;  %v588_v5 = vsub.f32 %v545_v39, %v576_v4  ;;  %v573_v8 = vpop.xlane.xlu0 %572  ;;  %v151_v4 = vld [vmem:[%s3116_s6 + $0x68] sm:$0xff] }
 0x3bb   :  { %2403 = vpow2.f32 %v595_v2  ;;  %v587_v9 = vsub.f32 %v540_v41, %v573_v8  ;;  %v150_v2 = vld [vmem:[%s3116_s6 + $0x60] sm:$0xff]  ;;  %v152_v8 = vld [vmem:[%s3116_s6 + $0x70] sm:$0xff] }
 0x3bc   :  { %v601_v12 = vmul.f32 1.442695, %v588_v5  ;;  %v2314_v5 = vpack.c.bf16 %v151_v4, %v150_v2  ;;  %v78_v2 = vld [vmem:[#allocation5] sm:$0xff] }
 0x3bd   :  { %v599_v13 = vmul.f32 1.442695, %v587_v9  ;;  %v582_v16 = vpop.xlane.xlu1 %581  ;;  %v153_v9 = vld [vmem:[%s3116_s6 + $0x78] sm:$0xff] }
 0x3be   :  { %2405 = vpow2.f32 %v601_v12  ;;  %v590_v17 = vsub.f32 %v555_v47, %v582_v16  ;;  %v579_v19 = vpop.xlane.xlu0 %578  ;;  %2315 = vmatprep.subr.bf16.mxu1 %v2314_v5  ;;  %v2318_v12 = vpack.c.bf16 %v153_v9, %v152_v8  ;;  %v923_v8 = vld [vmem:[%s3118_s8 + $0x10] sm:$0xff]  ;;  %v924_v9 = vld [vmem:[%s3118_s8 + $0x18] sm:$0xff] }
 0x3bf   :  { %2407 = vpow2.f32 %v599_v13  ;;  %v589_v20 = vsub.f32 %v550_v49, %v579_v19  ;;  %2317 = vmatpush3.bf16.msra.mxu1 %v2314_v5  ;;  %v2892_v5 = vld [vmem:[#allocation5 + $0x8] sm:$0xff] }
 0x3c0   :  { %v2398_v21 = vpop.eup %2397  ;;  %v605_v22 = vmul.f32 1.442695, %v590_v17  ;;  %2319 = vmatprep.subr.bf16.mxu1 %v2318_v12 }
 0x3c1   :  { %v2400_v23 = vpop.eup %2399  ;;  %v603_v24 = vmul.f32 1.442695, %v589_v20  ;;  %v610_v25 = vsel %vm558_vm2, %v2398_v21, 0.0 }
 0x3c2   :  { %2409 = vpow2.f32 %v605_v22  ;;  %611 = vadd.xlane.f32.xlu1 %v610_v25  ;;  %v607_v26 = vsel %vm558_vm2, %v2400_v23, 0.0 }
 0x3c3   :  { %2411 = vpow2.f32 %v603_v24  ;;  %608 = vadd.xlane.f32.xlu0 %v607_v26  ;;  %2321 = vmatpush3.bf16.msra.mxu1 %v2318_v12  ;;  %v2326_v12 = vpack.c.bf16 %v924_v9, %v923_v8 }
 0x3c4   :  { %v2402_v27 = vpop.eup %2401 }
 0x3c5   :  { %v2404_v28 = vpop.eup %2403  ;;  %v616_v29 = vsel %vm558_vm2, %v2402_v27, 0.0 }
 0x3c6   :  { %617 = vadd.xlane.f32.xlu1 %v616_v29  ;;  %v613_v30 = vsel %vm558_vm2, %v2404_v28, 0.0 }
 0x3c7   :  { %614 = vadd.xlane.f32.xlu0 %v613_v30 }
 0x3c8   :  { %v2406_v31 = vpop.eup %2405 }
 0x3c9   :  { %v2408_v32 = vpop.eup %2407  ;;  %v622_v33 = vsel %vm558_vm2, %v2406_v31, 0.0 }
 0x3ca   :  { %623 = vadd.xlane.f32.xlu1 %v622_v33  ;;  %v619_v34 = vsel %vm558_vm2, %v2408_v32, 0.0 }
 0x3cb   :  { %620 = vadd.xlane.f32.xlu0 %v619_v34 }
 0x3cc   :  { %v2410_v35 = vpop.eup %2409 }
 0x3cd   :  { %v2412_v36 = vpop.eup %2411  ;;  %v628_v37 = vsel %vm558_vm2, %v2410_v35, 0.0 }
 0x3ce   :  { %629 = vadd.xlane.f32.xlu1 %v628_v37  ;;  %v625_v38 = vsel %vm558_vm2, %v2412_v36, 0.0 }
 0x3cf   :  { %626 = vadd.xlane.f32.xlu0 %v625_v38  ;;  %v1951_v38 = vld [vmem:[%s3117_s7 + $0x3] ss:$0 sm:$0xff] }
 0x44f   :  { %v612_v39 = vpop.xlane.xlu1 %611 }
 0x450   :  { %2413 = vrcp.f32 %v612_v39  ;;  %v609_v40 = vpop.xlane.xlu0 %608 }
 0x451   :  { %2415 = vrcp.f32 %v609_v40 }
 0x453   :  { %v618_v41 = vpop.xlane.xlu1 %617 }
 0x454   :  { %2417 = vrcp.f32 %v618_v41  ;;  %v615_v42 = vpop.xlane.xlu0 %614 }
 0x455   :  { %2419 = vrcp.f32 %v615_v42 }
 0x457   :  { %v624_v43 = vpop.xlane.xlu1 %623 }
 0x458   :  { %2421 = vrcp.f32 %v624_v43  ;;  %v621_v44 = vpop.xlane.xlu0 %620 }
 0x459   :  { %2423 = vrcp.f32 %v621_v44 }
 0x45a   :  { %v2414_v45 = vpop.eup %2413 }
 0x45b   :  { %v2416_v46 = vpop.eup %2415  ;;  %v630_v47 = vpop.xlane.xlu1 %629  ;;  %v640_v50 = vmul.f32 %v2414_v45, %v2398_v21 }
 0x45c   :  { %2425 = vrcp.f32 %v630_v47  ;;  %v627_v48 = vpop.xlane.xlu0 %626  ;;  %v639_v49 = vmul.f32 %v2416_v46, %v2400_v23 }
 0x45d   :  { %2427 = vrcp.f32 %v627_v48 }
 0x45e   :  { %v2418_v51 = vpop.eup %2417  ;;  %2151 = vmatprep.mubr.msk.f32.mxu0 %vm558_vm2, %v639_v49 }
 0x45f   :  { %v2420_v52 = vpop.eup %2419  ;;  %2152 = vmatmul.mubr.msk.f32.vlgmr.msra.gmra.mrb[2].mxu0 %vm558_vm2, %v640_v50  ;;  %v642_v54 = vmul.f32 %v2418_v51, %v2402_v27 }
 0x460   :  { %v641_v53 = vmul.f32 %v2420_v52, %v2404_v28 }
 0x462   :  { %v2422_v56 = vpop.eup %2421  ;;  %2154 = vmatprep.mubr.msk.f32.mxu0 %vm558_vm2, %v641_v53 }
 0x463   :  { %v2424_v57 = vpop.eup %2423  ;;  %2155 = vmatmul.mubr.msk.f32.gmra.mrb[4].mxu0 %vm558_vm2, %v642_v54  ;;  %v644_v59 = vmul.f32 %v2422_v56, %v2406_v31  ;;  %v925_v56 = vld [vmem:[%s3118_s8 + $0x20] sm:$0xff] }
 0x464   :  { %v643_v58 = vmul.f32 %v2424_v57, %v2408_v32  ;;  %v926_v57 = vld [vmem:[%s3118_s8 + $0x28] sm:$0xff] }
 0x466   :  { %v2426_v60 = vpop.eup %2425  ;;  %2157 = vmatprep.mubr.msk.f32.mxu0 %vm558_vm2, %v643_v58  ;;  %v2330_v58 = vpack.c.bf16 %v926_v57, %v925_v56  ;;  %v942_v57 = vld [vmem:[%s3113_s3 + $0x8] sm:$0xff] }
 0x467   :  { %v2428_v61 = vpop.eup %2427  ;;  %2158 = vmatmul.mubr.msk.f32.gmra.mrb[6].mxu0 %vm558_vm2, %v644_v59  ;;  %v646_v63 = vmul.f32 %v2426_v60, %v2410_v35  ;;  %v927_v59 = vld [vmem:[%s3118_s8 + $0x30] sm:$0xff]  ;;  %v928_v60 = vld [vmem:[%s3118_s8 + $0x38] sm:$0xff] }
 0x468   :  { %v645_v62 = vmul.f32 %v2428_v61, %v2412_v36  ;;  %2331 = vmatprep.subr.bf16.mxu1 %v2330_v58  ;;  %v2334_v61 = vpack.c.bf16 %v928_v60, %v927_v59 }
 0x46a   :  { %2160 = vmatprep.mubr.msk.f32.mxu0 %vm558_vm2, %v645_v62  ;;  %v921_v62 = vld [vmem:[%s3118_s8] sm:$0xff] }
 0x46b   :  { %2161 = vmatmul.mubr.msk.f32.gmra.mrb[8].mxu0 %vm558_vm2, %v646_v63  ;;  %v922_v63 = vld [vmem:[%s3118_s8 + $0x8] sm:$0xff] }
 0x46c   :  { %v2322_v4 = vpack.c.bf16 %v922_v63, %v921_v62  ;;  %v944_v63 = vld [vmem:[%s3113_s3 + $0x18] sm:$0xff] }
 0x46e   :  { %2323 = vmatprep.subr.bf16.mxu0 %v2322_v4 }
 0x46f   :  { %2325 = vmatpush3.bf16.msra.mxu0 %v2322_v4  ;;  %v943_v4 = vld [vmem:[%s3113_s3 + $0x10] sm:$0xff] }
 0x470   :  { %2327 = vmatprep.subr.bf16.mxu0 %v2326_v12 }
 0x473   :  { %2329 = vmatpush3.bf16.msra.mxu0 %v2326_v12 }
 0x532   :  { %v2153_v13 = vpop.f32.mrb[2].mxu0 }
 0x533   :  { %v737_v16 = vpop.f32.mrb[3].mxu0  ;;  %v777_v19 = vmul.f32 %v2153_v13, %v2740_v6 }
 0x534   :  { %v776_v22 = vmul.f32 %v737_v16, %v2720_v55 }
 0x536   :  { %v2156_v17 = vpop.f32.mrb[4].mxu0 }
 0x537   :  { %v779_v20 = vmul.f32 %v2156_v17, %v2752_v10  ;;  %v747_v21 = vpop.f32.mrb[5].mxu0 }
 0x538   :  { %v778_v23 = vmul.f32 %v747_v21, %v2745_v7 }
 0x539   :  { %v785_v24 = vadd.f32 %v779_v20, %v777_v19 }
 0x53a   :  { %v784_v25 = vadd.f32 %v778_v23, %v776_v22  ;;  %v2159_v26 = vpop.f32.mrb[6].mxu0  ;;  %v1954_v23 = vld [vmem:[%s3115_s5 + $0x2] ss:$0 sm:$0xff] }
 0x53b   :  { %v781_v27 = vmul.f32 %v2159_v26, %v2766_v14  ;;  %v757_v28 = vpop.f32.mrb[7].mxu0 }
 0x53c   :  { %v780_v29 = vmul.f32 %v757_v28, %v2758_v11 }
 0x53d   :  { %v787_v30 = vadd.f32 %v785_v24, %v781_v27  ;;  %v1955_v27 = vld [vmem:[%s3115_s5 + $0x3] ss:$0 sm:$0xff] }
 0x53e   :  { %v786_v31 = vadd.f32 %v784_v25, %v780_v29  ;;  %v2162_v32 = vpop.f32.mrb[8].mxu0 }
 0x53f   :  { %v783_v33 = vmul.f32 %v2162_v32, %v2780_v18  ;;  %v767_v34 = vpop.f32.mrb[9].mxu0  ;;  %v1959_v32 = vld [vmem:[%s3119_s9 + $0x1] ss:$0 sm:$0xff] }
 0x540   :  { %v782_v35 = vmul.f32 %v767_v34, %v2772_v15 }
 0x541   :  { %v789_v36 = vadd.f32 %v787_v30, %v783_v33 }
 0x542   :  { %v788_v37 = vadd.f32 %v786_v31, %v782_v35 }
 0x544   :  { %2171 = vmatprep.mubr.msk.f32.mxu1 %vm94_vm0, %v788_v37 }
 0x545   :  { %2172 = vmatmul.mubr.msk.f32.vlgmr.msra.gmra.mrb[12].mxu1 %vm94_vm0, %v789_v36 }
 0x546   :  { %2333 = vmatpush3.bf16.msra.mxu1 %v2330_v58  ;;  %2193 = vmatprep.mubr.msk.f32.mxu1 %vm94_vm0, %v78_v2  ;;  %v941_v58 = vld [vmem:[%s3113_s3] sm:$0xff] }
 0x547   :  { %2335 = vmatprep.subr.bf16.mxu1 %v2334_v61 }
 0x54a   :  { %2337 = vmatpush3.bf16.msra.mxu1 %v2334_v61 }
 0x54d   :  { %2194 = vmatmul.mubr.msk.f32.vlgmr.msra.gmra.mrb[14].mxu1 %vm94_vm0, %v2892_v5 }
 0x618   :  { %v2173_v39 = vpop.f32.mrb[12].mxu1 }
 0x619   :  { %v874_v40 = vadd.f32 %v2173_v39, %v1951_v38  ;;  %v868_v41 = vpop.f32.mrb[13].mxu1 }
 0x61a   :  { %v869_v42 = vadd.f32 %v1951_v38, %v868_v41  ;;  %v1956_v38 = vld [vmem:[%s3119_s9] ss:$0 sm:$0xff] }
 0x61b   :  { %v2860_v43 = vadd.f32 %v874_v40, %v2653_v1 }
 0x61c   :  { %v2863_v44 = vadd.f32 %v869_v42, %v2651_v0 }
 0x61d   :  { %v882_v45 = vsel %vm94_vm0, %v2860_v43, 0.0 }
 0x61e   :  { %883 = vadd.xlane.f32.xlu1 %v882_v45  ;;  %v879_v46 = vsel %vm94_vm0, %v2863_v44, 0.0 }
 0x61f   :  { %880 = vadd.xlane.f32.xlu0 %v879_v46 }
 0x620   :  { %v2195_v33 = vpop.f32.mrb[14].mxu1 }
 0x621   :  { %v1120_v34 = vadd.f32 %v2195_v33, %v1959_v32  ;;  %v1114_v35 = vpop.f32.mrb[15].mxu1 }
 0x622   :  { %v1115_v36 = vadd.f32 %v1959_v32, %v1114_v35 }
 0x624   :  { %v2346_v37 = vpack.c.bf16 %v1120_v34, %v1115_v36 }
 0x626   :  { %2348 = vmatprep.subr.msk.bf16.mxu1 %vm2729_vm1, %v2346_v37 }
 0x627   :  { %2351 = vmatpush3.bf16.xpose.msk.msra.mxu1 %vm2729_vm1, %v2346_v37 }
 0x6ab   :  { %v884_v47 = vpop.xlane.xlu1 %883 }
 0x6ac   :  { %v886_v48 = vmul.f32 0.03125, %v884_v47  ;;  %v881_v49 = vpop.xlane.xlu0 %880 }
 0x6ad   :  { %v885_v50 = vmul.f32 0.03125, %v881_v49 }
 0x6ae   :  { %v888_v51 = vsub.f32 %v2860_v43, %v886_v48 }
 0x6af   :  { %v887_v1 = vsub.f32 %v2863_v44, %v885_v50 }
 0x6b0   :  { %v890_v52 = vmul.f32 %v888_v51, %v888_v51 }
 0x6b1   :  { %v889_v53 = vmul.f32 %v887_v1, %v887_v1 }
 0x6b2   :  { %v894_v0 = vsel %vm94_vm0, %v890_v52, 0.0  ;;  %v930_v52 = vld [vmem:[%s3118_s8 + $0x48] sm:$0xff] }
 0x6b3   :  { %895 = vadd.xlane.f32.xlu1 %v894_v0  ;;  %v891_v54 = vsel %vm94_vm0, %v889_v53, 0.0  ;;  %v931_v53 = vld [vmem:[%s3118_s8 + $0x50] sm:$0xff] }
 0x6b4   :  { %892 = vadd.xlane.f32.xlu0 %v891_v54  ;;  %v932_v54 = vld [vmem:[%s3118_s8 + $0x58] sm:$0xff] }
 0x6b5   :  { %v2342_v56 = vpack.c.bf16 %v932_v54, %v931_v53 }
 0x740   :  { %v896_v13 = vpop.xlane.xlu1 %895 }
 0x741   :  { %v898_v16 = vmul.f32 0.03125, %v896_v13  ;;  %v893_v17 = vpop.xlane.xlu0 %892 }
 0x742   :  { %v897_v19 = vmul.f32 0.03125, %v893_v17 }
 0x743   :  { %v900_v20 = vadd.f32 1e-06, %v898_v16  ;;  %v946_v16 = vld [vmem:[%s3113_s3 + $0x28] sm:$0xff] }
 0x744   :  { %v899_v21 = vadd.f32 1e-06, %v897_v19  ;;  %v945_v19 = vld [vmem:[%s3113_s3 + $0x20] sm:$0xff] }
 0x745   :  { %2429 = vrsqrt.f32 %v900_v20 }
 0x746   :  { %2431 = vrsqrt.f32 %v899_v21 }
 0x74f   :  { %v2430_v22 = vpop.eup %2429 }
 0x750   :  { %v2432_v24 = vpop.eup %2431  ;;  %v904_v25 = vmul.f32 %v2430_v22, %v888_v51 }
 0x751   :  { %v903_v26 = vmul.f32 %v2432_v24, %v887_v1  ;;  %v929_v1 = vld [vmem:[%s3118_s8 + $0x40] sm:$0xff] }
 0x752   :  { %v912_v28 = vmul.f32 %v1954_v23, %v904_v25  ;;  %v2338_v0 = vpack.c.bf16 %v930_v52, %v929_v1  ;;  %v948_v25 = vld [vmem:[%s3113_s3 + $0x38] sm:$0xff] }
 0x753   :  { %v911_v29 = vmul.f32 %v1954_v23, %v903_v26 }
 0x754   :  { %v920_v31 = vadd.f32 %v1955_v27, %v912_v28  ;;  %2339 = vmatprep.subr.bf16.mxu0 %v2338_v0 }
 0x755   :  { %v919_v30 = vadd.f32 %v1955_v27, %v911_v29  ;;  %v947_v27 = vld [vmem:[%s3113_s3 + $0x30] sm:$0xff] }
 0x757   :  { %2182 = vmatprep.mubr.msk.f32.mxu0 %vm94_vm0, %v919_v30 }
 0x758   :  { %2183 = vmatmul.mubr.msk.f32.vlgmr.msra.gmra.mrb[10].mxu0 %vm94_vm0, %v920_v31 }
 0x759   :  { %2204 = vmatprep.mubr.msk.f32.mxu0 %vm94_vm0, %v78_v2  ;;  %2341 = vmatpush3.bf16.msra.mxu0 %v2338_v0 }
 0x75a   :  { %2343 = vmatprep.subr.bf16.mxu0 %v2342_v56 }
 0x75d   :  { %2345 = vmatpush3.bf16.msra.mxu0 %v2342_v56 }
 0x760   :  { %2205 = vmatmul.mubr.msk.f32.vlgmr.msra.gmra.mrb[12].mxu0 %vm94_vm0, %v2892_v5 }
 0x82b   :  { %v2184_v39 = vpop.f32.mrb[10].mxu0 }
 0x82c   :  { %v1033_v40 = vadd.f32 %v2184_v39, %v1956_v38  ;;  %v1027_v41 = vpop.f32.mrb[11].mxu0 }
 0x82d   :  { %v1028_v42 = vadd.f32 %v1956_v38, %v1027_v41 }
 0x82e   :  { %v1205_v46 = vmul.f32 %v1033_v40, %v2740_v6  ;;  %v1207_v3 = vmul.f32 %v1033_v40, %v2752_v10  ;;  %v1209_v49 = vmul.f32 %v1033_v40, %v2766_v14  ;;  %v1211_v51 = vmul.f32 %v1033_v40, %v2780_v18 }
 0x82f   :  { %v1204_v45 = vmul.f32 %v1028_v42, %v2720_v55  ;;  %v1206_v47 = vmul.f32 %v1028_v42, %v2745_v7  ;;  %v1208_v48 = vmul.f32 %v1028_v42, %v2758_v11  ;;  %v1210_v50 = vmul.f32 %v1028_v42, %v2772_v15 }
 0x831   :  { %2211 = vmatprep.mubr.msk.f32.mxu1 %vm94_vm0, %v1204_v45 }
 0x832   :  { %2212 = vmatmul.mubr.msk.f32.vlgmr.msra.gmra.mrb[16].mxu1 %vm94_vm0, %v1205_v46 }
 0x833   :  { %2214 = vmatprep.mubr.msk.f32.mxu1 %vm94_vm0, %v1206_v47 }
 0x836   :  { %2215 = vmatmul.mubr.msk.f32.gmra.mrb[18].mxu1 %vm94_vm0, %v1207_v3 }
 0x837   :  { %2217 = vmatprep.mubr.msk.f32.mxu1 %vm94_vm0, %v1208_v48 }
 0x83a   :  { %2218 = vmatmul.mubr.msk.f32.gmra.mrb[20].mxu1 %vm94_vm0, %v1209_v49 }
 0x83b   :  { %2220 = vmatprep.mubr.msk.f32.mxu1 %vm94_vm0, %v1210_v50 }
 0x83e   :  { %2221 = vmatmul.mubr.msk.f32.gmra.mrb[22].mxu1 %vm94_vm0, %v1211_v51 }
 0x905   :  { %v2213_v59 = vpop.f32.mrb[16].mxu1 }
 0x906   :  { %v1314_v60 = vadd.f32 %v2213_v59, %v942_v57  ;;  %v1308_v61 = vpop.f32.mrb[17].mxu1 }
 0x907   :  { %v1309_v62 = vadd.f32 %v1308_v61, %v941_v58 }
 0x908   :  { %v1350_v2 = vsel %vm558_vm2, %v1314_v60, -inf }
 0x909   :  { %1351 = vmax.xlane.f32.xlu1 %v1350_v2  ;;  %v2216_v5 = vpop.f32.mrb[18].mxu1  ;;  %v1347_v8 = vsel %vm558_vm2, %v1309_v62, -inf }
 0x90a   :  { %v1324_v9 = vadd.f32 %v2216_v5, %v944_v63  ;;  %v1318_v12 = vpop.f32.mrb[19].mxu1  ;;  %1348 = vmax.xlane.f32.xlu0 %v1347_v8 }
 0x90b   :  { %v1319_v13 = vadd.f32 %v1318_v12, %v943_v4 }
 0x90c   :  { %v1356_v17 = vsel %vm558_vm2, %v1324_v9, -inf }
 0x90d   :  { %1357 = vmax.xlane.f32.xlu1 %v1356_v17  ;;  %v2219_v20 = vpop.f32.mrb[20].mxu1  ;;  %v1353_v21 = vsel %vm558_vm2, %v1319_v13, -inf }
 0x90e   :  { %v1334_v22 = vadd.f32 %v2219_v20, %v946_v16  ;;  %v1328_v23 = vpop.f32.mrb[21].mxu1  ;;  %1354 = vmax.xlane.f32.xlu0 %v1353_v21  ;;  %v2206_v21 = vpop.f32.mrb[12].mxu0 }
 0x90f   :  { %v1329_v24 = vadd.f32 %v1328_v23, %v945_v19  ;;  %v1195_v23 = vpop.f32.mrb[13].mxu0 }
 0x910   :  { %v1362_v26 = vsel %vm558_vm2, %v1334_v22, -inf }
 0x911   :  { %1363 = vmax.xlane.f32.xlu1 %v1362_v26  ;;  %v2222_v28 = vpop.f32.mrb[22].mxu1  ;;  %v1359_v29 = vsel %vm558_vm2, %v1329_v24, -inf }
 0x912   :  { %v1344_v30 = vadd.f32 %v2222_v28, %v948_v25  ;;  %v1338_v31 = vpop.f32.mrb[23].mxu1  ;;  %1360 = vmax.xlane.f32.xlu0 %v1359_v29 }
 0x913   :  { %v1339_v32 = vadd.f32 %v1338_v31, %v947_v27 }
 0x914   :  { %v1368_v33 = vsel %vm558_vm2, %v1344_v30, -inf }
 0x915   :  { %1369 = vmax.xlane.f32.xlu1 %v1368_v33  ;;  %v1365_v34 = vsel %vm558_vm2, %v1339_v32, -inf }
 0x916   :  { %1366 = vmax.xlane.f32.xlu0 %v1365_v34 }
 0x996   :  { %v1352_v35 = vpop.xlane.xlu1 %1351 }
 0x997   :  { %v1372_v36 = vsub.f32 %v1314_v60, %v1352_v35  ;;  %v1349_v37 = vpop.xlane.xlu0 %1348 }
 0x998   :  { %v1371_v38 = vsub.f32 %v1309_v62, %v1349_v37 }
 0x999   :  { %v1381_v39 = vmul.f32 1.442695, %v1372_v36 }
 0x99a   :  { %v1379_v40 = vmul.f32 1.442695, %v1371_v38  ;;  %v1358_v41 = vpop.xlane.xlu1 %1357 }
 0x99b   :  { %2433 = vpow2.f32 %v1381_v39  ;;  %v1374_v42 = vsub.f32 %v1324_v9, %v1358_v41  ;;  %v1355_v45 = vpop.xlane.xlu0 %1354 }
 0x99c   :  { %2435 = vpow2.f32 %v1379_v40  ;;  %v1373_v46 = vsub.f32 %v1319_v13, %v1355_v45 }
 0x99d   :  { %v1385_v47 = vmul.f32 1.442695, %v1374_v42 }
 0x99e   :  { %v1383_v3 = vmul.f32 1.442695, %v1373_v46  ;;  %v1364_v48 = vpop.xlane.xlu1 %1363 }
 0x99f   :  { %2437 = vpow2.f32 %v1385_v47  ;;  %v1376_v49 = vsub.f32 %v1334_v22, %v1364_v48  ;;  %v1361_v50 = vpop.xlane.xlu0 %1360  ;;  %v1962_v22 = vld [vmem:[%s3119_s9 + $0x2] ss:$0 sm:$0xff] }
 0x9a0   :  { %2439 = vpow2.f32 %v1383_v3  ;;  %v1375_v51 = vsub.f32 %v1329_v24, %v1361_v50  ;;  %v1201_v24 = vadd.f32 %v2206_v21, %v1962_v22  ;;  %v1196_v25 = vadd.f32 %v1962_v22, %v1195_v23 }
 0x9a1   :  { %v1389_v1 = vmul.f32 1.442695, %v1376_v49 }
 0x9a2   :  { %v1387_v52 = vmul.f32 1.442695, %v1375_v51  ;;  %v1370_v53 = vpop.xlane.xlu1 %1369  ;;  %v2352_v26 = vpack.c.bf16 %v1201_v24, %v1196_v25 }
 0x9a3   :  { %2441 = vpow2.f32 %v1389_v1  ;;  %v1378_v0 = vsub.f32 %v1344_v30, %v1370_v53  ;;  %v1367_v54 = vpop.xlane.xlu0 %1366  ;;  %v933_v1 = vld [vmem:[%s3118_s8 + $0x60] sm:$0xff] }
 0x9a4   :  { %2443 = vpow2.f32 %v1387_v52  ;;  %v1377_v56 = vsub.f32 %v1339_v32, %v1367_v54  ;;  %2353 = vmatprep.subr.bf16.mxu0 %v2352_v26  ;;  %v934_v52 = vld [vmem:[%s3118_s8 + $0x68] sm:$0xff]  ;;  %v936_v54 = vld [vmem:[%s3118_s8 + $0x78] sm:$0xff] }
 0x9a5   :  { %v2434_v57 = vpop.eup %2433  ;;  %v1393_v58 = vmul.f32 1.442695, %v1378_v0  ;;  %2355 = vmatpush3.bf16.msra.mxu0 %v2352_v26  ;;  %v2356_v53 = vpack.c.bf16 %v934_v52, %v933_v1  ;;  %v935_v0 = vld [vmem:[%s3118_s8 + $0x70] sm:$0xff] }
 0x9a6   :  { %v2436_v59 = vpop.eup %2435  ;;  %v1391_v60 = vmul.f32 1.442695, %v1377_v56  ;;  %v1398_v61 = vsel %vm558_vm2, %v2434_v57, 0.0  ;;  %v2360_v56 = vpack.c.bf16 %v936_v54, %v935_v0 }
 0x9a7   :  { %2445 = vpow2.f32 %v1393_v58  ;;  %1399 = vadd.xlane.f32.xlu1 %v1398_v61  ;;  %v1395_v62 = vsel %vm558_vm2, %v2436_v59, 0.0  ;;  %2357 = vmatprep.subr.bf16.mxu0 %v2356_v53 }
 0x9a8   :  { %2447 = vpow2.f32 %v1391_v60  ;;  %1396 = vadd.xlane.f32.xlu0 %v1395_v62 }
 0x9a9   :  { %v2438_v63 = vpop.eup %2437 }
 0x9aa   :  { %v2440_v2 = vpop.eup %2439  ;;  %v1404_v4 = vsel %vm558_vm2, %v2438_v63, 0.0 }
 0x9ab   :  { %1405 = vadd.xlane.f32.xlu1 %v1404_v4  ;;  %v1401_v5 = vsel %vm558_vm2, %v2440_v2, 0.0 }
 0x9ac   :  { %1402 = vadd.xlane.f32.xlu0 %v1401_v5 }
 0x9ad   :  { %v2442_v8 = vpop.eup %2441 }
 0x9ae   :  { %v2444_v9 = vpop.eup %2443  ;;  %v1410_v12 = vsel %vm558_vm2, %v2442_v8, 0.0 }
 0x9af   :  { %1411 = vadd.xlane.f32.xlu1 %v1410_v12  ;;  %v1407_v13 = vsel %vm558_vm2, %v2444_v9, 0.0 }
 0x9b0   :  { %1408 = vadd.xlane.f32.xlu0 %v1407_v13 }
 0x9b1   :  { %v2446_v16 = vpop.eup %2445 }
 0x9b2   :  { %v2448_v17 = vpop.eup %2447  ;;  %v1416_v19 = vsel %vm558_vm2, %v2446_v16, 0.0 }
 0x9b3   :  { %1417 = vadd.xlane.f32.xlu1 %v1416_v19  ;;  %v1413_v20 = vsel %vm558_vm2, %v2448_v17, 0.0 }
 0x9b4   :  { %1414 = vadd.xlane.f32.xlu0 %v1413_v20 }
 0xa34   :  { %v1400_v27 = vpop.xlane.xlu1 %1399 }
 0xa35   :  { %2449 = vrcp.f32 %v1400_v27  ;;  %v1397_v28 = vpop.xlane.xlu0 %1396 }
 0xa36   :  { %2451 = vrcp.f32 %v1397_v28 }
 0xa38   :  { %v1406_v29 = vpop.xlane.xlu1 %1405 }
 0xa39   :  { %2453 = vrcp.f32 %v1406_v29  ;;  %v1403_v30 = vpop.xlane.xlu0 %1402 }
 0xa3a   :  { %2455 = vrcp.f32 %v1403_v30 }
 0xa3c   :  { %v1412_v31 = vpop.xlane.xlu1 %1411 }
 0xa3d   :  { %2457 = vrcp.f32 %v1412_v31  ;;  %v1409_v32 = vpop.xlane.xlu0 %1408 }
 0xa3e   :  { %2459 = vrcp.f32 %v1409_v32 }
 0xa3f   :  { %v2450_v33 = vpop.eup %2449 }
 0xa40   :  { %v2452_v34 = vpop.eup %2451  ;;  %v1418_v35 = vpop.xlane.xlu1 %1417  ;;  %v1428_v38 = vmul.f32 %v2450_v33, %v2434_v57 }
 0xa41   :  { %2461 = vrcp.f32 %v1418_v35  ;;  %v1415_v36 = vpop.xlane.xlu0 %1414  ;;  %v1427_v37 = vmul.f32 %v2452_v34, %v2436_v59  ;;  %v1709_v34 = vld [vmem:[%s3120_s10] sm:$0xff]  ;;  %v1710_v35 = vld [vmem:[%s3120_s10 + $0x8] sm:$0xff] }
 0xa42   :  { %2463 = vrcp.f32 %v1415_v36  ;;  %v2364_v36 = vpack.c.bf16 %v1710_v35, %v1709_v34 }
 0xa43   :  { %v2454_v39 = vpop.eup %2453  ;;  %2227 = vmatprep.mubr.msk.f32.mxu0 %vm558_vm2, %v1427_v37  ;;  %v1711_v37 = vld [vmem:[%s3120_s10 + $0x10] sm:$0xff] }
 0xa44   :  { %v2456_v40 = vpop.eup %2455  ;;  %2228 = vmatmul.mubr.msk.f32.vlgmr.msra.gmra.mrb[14].mxu0 %vm558_vm2, %v1428_v38  ;;  %v1430_v42 = vmul.f32 %v2454_v39, %v2438_v63  ;;  %2365 = vmatprep.subr.bf16.mxu1 %v2364_v36  ;;  %v1712_v38 = vld [vmem:[%s3120_s10 + $0x18] sm:$0xff] }
 0xa45   :  { %v1429_v41 = vmul.f32 %v2456_v40, %v2440_v2  ;;  %2359 = vmatpush3.bf16.msra.mxu0 %v2356_v53  ;;  %2367 = vmatpush3.bf16.msra.mxu1 %v2364_v36  ;;  %v2368_v39 = vpack.c.bf16 %v1712_v38, %v1711_v37  ;;  %v1801_v40 = vld [vmem:[%s3122_s12] sm:$0xff] }
 0xa46   :  { %2361 = vmatprep.subr.bf16.mxu0 %v2360_v56 }
 0xa47   :  { %v2458_v45 = vpop.eup %2457  ;;  %2230 = vmatprep.mubr.msk.f32.mxu0 %vm558_vm2, %v1429_v41  ;;  %2369 = vmatprep.subr.bf16.mxu1 %v2368_v39  ;;  %v1802_v41 = vld [vmem:[%s3122_s12 + $0x8] sm:$0xff] }
 0xa48   :  { %v2460_v46 = vpop.eup %2459  ;;  %2231 = vmatmul.mubr.msk.f32.gmra.mrb[16].mxu0 %vm558_vm2, %v1430_v42  ;;  %v1432_v3 = vmul.f32 %v2458_v45, %v2442_v8  ;;  %v1803_v42 = vld [vmem:[%s3122_s12 + $0x10] sm:$0xff]  ;;  %v2372_v45 = vpack.c.bf16 %v1802_v41, %v1801_v40 }
 0xa49   :  { %v1431_v47 = vmul.f32 %v2460_v46, %v2444_v9  ;;  %2363 = vmatpush3.bf16.msra.mxu0 %v2360_v56  ;;  %2371 = vmatpush3.bf16.msra.mxu1 %v2368_v39  ;;  %v1804_v46 = vld [vmem:[%s3122_s12 + $0x18] sm:$0xff]  ;;  %v1986_v56 = vld [vmem:[%s3115_s5 + $0x4] ss:$0 sm:$0xff] }
 0xa4a   :  { %2373 = vmatprep.subr.bf16.mxu0 %v2372_v45 }
 0xa4b   :  { %v2462_v48 = vpop.eup %2461  ;;  %2233 = vmatprep.mubr.msk.f32.mxu0 %vm558_vm2, %v1431_v47  ;;  %v2376_v47 = vpack.c.bf16 %v1804_v46, %v1803_v42 }
 0xa4c   :  { %v2464_v49 = vpop.eup %2463  ;;  %2234 = vmatmul.mubr.msk.f32.gmra.mrb[18].mxu0 %vm558_vm2, %v1432_v3  ;;  %v1434_v51 = vmul.f32 %v2462_v48, %v2446_v16  ;;  %v1805_v3 = vld [vmem:[%s3122_s12 + $0x20] sm:$0xff]  ;;  %v1806_v48 = vld [vmem:[%s3122_s12 + $0x28] sm:$0xff] }
 0xa4d   :  { %v1433_v50 = vmul.f32 %v2464_v49, %v2448_v17  ;;  %v2380_v49 = vpack.c.bf16 %v1806_v48, %v1805_v3 }
 0xa4f   :  { %2236 = vmatprep.mubr.msk.f32.mxu0 %vm558_vm2, %v1433_v50 }
 0xa50   :  { %2237 = vmatmul.mubr.msk.f32.gmra.mrb[20].mxu0 %vm558_vm2, %v1434_v51 }
 0xb17   :  { %v2229_v57 = vpop.f32.mrb[14].mxu0 }
 0xb18   :  { %v1525_v58 = vpop.f32.mrb[15].mxu0  ;;  %v1565_v60 = vmul.f32 %v2229_v57, %v2740_v6 }
 0xb19   :  { %v1564_v63 = vmul.f32 %v1525_v58, %v2720_v55 }
 0xb1b   :  { %v2232_v59 = vpop.f32.mrb[16].mxu0 }
 0xb1c   :  { %v1567_v61 = vmul.f32 %v2232_v59, %v2752_v10  ;;  %v1535_v62 = vpop.f32.mrb[17].mxu0 }
 0xb1d   :  { %v1566_v2 = vmul.f32 %v1535_v62, %v2745_v7  ;;  %v1983_v7 = vld [vmem:[%s3119_s9 + $0x3] ss:$0 sm:$0xff] }
 0xb1e   :  { %v1573_v4 = vadd.f32 %v1567_v61, %v1565_v60  ;;  %v1987_v60 = vld [vmem:[%s3115_s5 + $0x5] ss:$0 sm:$0xff] }
 0xb1f   :  { %v1572_v5 = vadd.f32 %v1566_v2, %v1564_v63  ;;  %v2235_v8 = vpop.f32.mrb[18].mxu0 }
 0xb20   :  { %v1569_v9 = vmul.f32 %v2235_v8, %v2766_v14  ;;  %v1545_v12 = vpop.f32.mrb[19].mxu0 }
 0xb21   :  { %v1568_v13 = vmul.f32 %v1545_v12, %v2758_v11 }
 0xb22   :  { %v1575_v16 = vadd.f32 %v1573_v4, %v1569_v9  ;;  %v1807_v4 = vld [vmem:[%s3122_s12 + $0x30] sm:$0xff]  ;;  %v1988_v9 = vld [vmem:[%s3121_s11] ss:$0 sm:$0xff] }
 0xb23   :  { %v1574_v17 = vadd.f32 %v1572_v5, %v1568_v13  ;;  %v2238_v19 = vpop.f32.mrb[20].mxu0  ;;  %v1808_v5 = vld [vmem:[%s3122_s12 + $0x38] sm:$0xff]  ;;  %s2545_s12 = smov [#allocation7]  }
 0xb24   :  { %v1571_v6 = vmul.f32 %v2238_v19, %v2780_v18  ;;  %v1555_v20 = vpop.f32.mrb[21].mxu0  ;;  %v2384_v8 = vpack.c.bf16 %v1808_v5, %v1807_v4  ;;  %s1909_s19 = sshll.u32 %s2545_s12, 4  ;;  %s1910_s19 = int_to_ptr.vmem [resolvable:$true] %s1909_s19 }
 0xb25   :  { %v1570_v10 = vmul.f32 %v1555_v20, %v2772_v15  ;;  %s2513_s11 = scalar_lea.vmem %s1910_s19, 256  ;;  %p2518_p3 = scmp.lt.s32.totalorder %s1910_s19, %s1910_s19 }
 0xb26   :  { %v1577_v21 = vadd.f32 %v1575_v16, %v1571_v6  ;;  %v1993_v6 = vld [vmem:[%s3123_s13] ss:$0 sm:$0xff]  ;;  %p2514_p2 = scmp.ne.s32.totalorder %s1910_s19, %s2513_s11  ;;  %p2519_p4 = scmp.lt.s32.totalorder %s2513_s11, %s2513_s11 }
 0xb27   :  { %v1576_v55 = vadd.f32 %v1574_v17, %v1570_v10 }
 0xb28   :  { %p2520_p5 = por %p2519_p4, %p2518_p3 }
 0xb29   :  { %2247 = vmatprep.mubr.msk.f32.mxu0 %vm94_vm0, %v1576_v55 }
 0xb2a   :  { %2248 = vmatmul.mubr.msk.f32.vlgmr.msra.gmra.mrb[22].mxu0 %vm94_vm0, %v1577_v21  ;;  %p2521_p6 = pnand %p2520_p5, %p2514_p2 }
 0xb2b   :  { %2375 = vmatpush3.bf16.msra.mxu0 %v2372_v45 }
 0xb2c   :  { %2377 = vmatprep.subr.bf16.mxu0 %v2376_v47 }
 0xb2f   :  { %2379 = vmatpush3.bf16.msra.mxu0 %v2376_v47 }
 0xb30   :  { %2381 = vmatprep.subr.bf16.mxu0 %v2380_v49 }
 0xb33   :  { %2383 = vmatpush3.bf16.msra.mxu0 %v2380_v49 }
 0xb34   :  { %2385 = vmatprep.subr.bf16.mxu0 %v2384_v8 }
 0xb37   :  { %2387 = vmatpush3.bf16.msra.mxu0 %v2384_v8 }
 0xbfd   :  { %v2249_v14 = vpop.f32.mrb[22].mxu0 }
 0xbfe   :  { %v1662_v11 = vadd.f32 %v2249_v14, %v1983_v7  ;;  %v1656_v22 = vpop.f32.mrb[23].mxu0 }
 0xbff   :  { %v1657_v23 = vadd.f32 %v1983_v7, %v1656_v22 }
 0xc00   :  { %v3028_v24 = vadd.f32 %v1662_v11, %v2860_v43 }
 0xc01   :  { %v3031_v18 = vadd.f32 %v1657_v23, %v2863_v44 }
 0xc02   :  { %v1670_v15 = vsel %vm94_vm0, %v3028_v24, 0.0 }
 0xc03   :  { %1671 = vadd.xlane.f32.xlu1 %v1670_v15  ;;  %v1667_v25 = vsel %vm94_vm0, %v3031_v18, 0.0 }
 0xc04   :  { %1668 = vadd.xlane.f32.xlu0 %v1667_v25 }
 0xc90   :  { %v1672_v26 = vpop.xlane.xlu1 %1671 }
 0xc91   :  { %v1674_v27 = vmul.f32 0.03125, %v1672_v26  ;;  %v1669_v28 = vpop.xlane.xlu0 %1668 }
 0xc92   :  { %v1673_v29 = vmul.f32 0.03125, %v1669_v28 }
 0xc93   :  { %v1676_v30 = vsub.f32 %v3028_v24, %v1674_v27 }
 0xc94   :  { %v1675_v43 = vsub.f32 %v3031_v18, %v1673_v29 }
 0xc95   :  { %v1678_v31 = vmul.f32 %v1676_v30, %v1676_v30 }
 0xc96   :  { %v1677_v32 = vmul.f32 %v1675_v43, %v1675_v43 }
 0xc97   :  { %v1682_v44 = vsel %vm94_vm0, %v1678_v31, 0.0 }
 0xc98   :  { %1683 = vadd.xlane.f32.xlu1 %v1682_v44  ;;  %v1679_v33 = vsel %vm94_vm0, %v1677_v32, 0.0 }
 0xc99   :  { %1680 = vadd.xlane.f32.xlu0 %v1679_v33 }
 0xd25   :  { %v1684_v50 = vpop.xlane.xlu1 %1683 }
 0xd26   :  { %v1686_v51 = vmul.f32 0.03125, %v1684_v50  ;;  %v1681_v1 = vpop.xlane.xlu0 %1680 }
 0xd27   :  { %v1685_v52 = vmul.f32 0.03125, %v1681_v1 }
 0xd28   :  { %v1688_v53 = vadd.f32 1e-06, %v1686_v51 }
 0xd29   :  { %v1687_v0 = vadd.f32 1e-06, %v1685_v52 }
 0xd2a   :  { %2465 = vrsqrt.f32 %v1688_v53 }
 0xd2b   :  { %2467 = vrsqrt.f32 %v1687_v0 }
 0xd34   :  { %v2466_v54 = vpop.eup %2465 }
 0xd35   :  { %v2468_v57 = vpop.eup %2467  ;;  %v1692_v58 = vmul.f32 %v2466_v54, %v1676_v30 }
 0xd36   :  { %v1691_v59 = vmul.f32 %v2468_v57, %v1675_v43 }
 0xd37   :  { %v1700_v61 = vmul.f32 %v1986_v56, %v1692_v58 }
 0xd38   :  { %v1699_v62 = vmul.f32 %v1986_v56, %v1691_v59 }
 0xd39   :  { %v1708_v2 = vadd.f32 %v1987_v60, %v1700_v61 }
 0xd3a   :  { %v1707_v63 = vadd.f32 %v1987_v60, %v1699_v62 }
 0xd3c   :  { %2258 = vmatprep.mubr.msk.f32.mxu1 %vm94_vm0, %v1707_v63 }
 0xd3d   :  { %2259 = vmatmul.mubr.msk.f32.vlgmr.msra.gmra.mrb[24].mxu1 %vm94_vm0, %v1708_v2 }
 0xe10   :  { %v2260_v12 = vpop.f32.mrb[24].mxu1 }
 0xe11   :  { %v1792_v13 = vpop.f32.mrb[25].mxu1  ;;  %v1798_v17 = vadd.f32 %v2260_v12, %v1988_v9 }
 0xe12   :  { %v1793_v16 = vadd.f32 %v1988_v9, %v1792_v13 }
 0xe14   :  { %2277 = vmatprep.mubr.msk.f32.mxu0 %vm1809_vm3, %v1793_v16 }
 0xe15   :  { %2278 = vmatmul.mubr.msk.f32.vlgmr.msra.gmra.mrb[24].mxu0 %vm1809_vm3, %v1798_v17 }
 0xee8   :  { %v2279_v19 = vpop.f32.mrb[24].mxu0 }
 0xee9   :  { %v1892_v20 = vadd.f32 %v2279_v19, %v3028_v24  ;;  %v1882_v10 = vpop.f32.mrb[25].mxu0 }
 0xeea   :  { %v1891_v21 = vadd.f32 %v1882_v10, %v3031_v18 }
 0xeeb   :  { %v1901_v55 = vadd.f32 %v1993_v6, %v1892_v20 }
 0xeec   :  { %v1900_v7 = vadd.f32 %v1993_v6, %v1891_v21 }
 0xeed   :  { %1903 = vst.msk [vmem:[#allocation7 + $0x8] sm:$0xff] %vm94_vm0, %v1901_v55 }
 0xeee   :  { %1902 = vst.msk [vmem:[#allocation7] sm:$0xff] %vm94_vm0, %v1900_v7 }
 0xeef   :  { %2524 = shalt.err (!%p2521_p6)
}
 0xef0   :  { %s2525_s21 = scalar_lea.hbm %s3124_s14, 256 }
 0xef1   :  { %p2526_p7 = scmp.ne.s32.totalorder %s3124_s14, %s2525_s21  ;;  %p2529_p8 = scmp.lt.u32.totalorder %s2525_s21, %s3124_s14 }
 0xef3   :  { %p2531_p9 = pnand %p2529_p8, %p2526_p7 }
 0xef5   :  { %2534 = shalt.err (!%p2531_p9)
}
 0xef6   :  { %1915 = dma.vmem_to_hbm [thread:$0]  %s1910_s19, 256, %s3124_s14, [#allocation4], %s2542_s23, %s2542_s23, %s2543_s24  }
 0xef7   :  { %2539 = dma.done.wait [#allocation4], 256  }
 0xef8   :  { %2540 = vsyncadd [#allocation4], 4294967040 }
 0xef9   :  { %1919 = vsyncpa [#allocation3], 1 }
 0xefa   :  { %1920 = vsyncpa [#allocation6], 1 }
 0xefb   :  { %1921 = vsyncpa [#allocation4], 1 }

</bundles_post_ra>
